<compile_context>
chip_gen: v5e
topology: v5e:2x2
jax: 0.10.0
libtpu: 0.0.40
codegen_flags: <defaults>
</compile_context>

<pallas_src>
import jax
import jax.numpy as jnp
from jax.experimental import pallas as pl
from jax.experimental.pallas import tpu as pltpu

PAD = 0
SEL = 32          # width of the batch one-hot selector block (>= padded batch)
BP = 8            # padded batch (f32 sublane tile)


class conf:
    num_users = 16
    num_items = 16
    vocab_sz = 256
    word_dim = 32
    hidden_dim = 32
    att_dim = 32
    aspect_dim = 32
    dropout = 0.1  # identity here (eval semantics)
    rev_len = 8


# ----------------------------------------------------------------------------
# Fused decoder + cross-entropy kernel (single invocation, grid=(1,)).
# ----------------------------------------------------------------------------
def fused_decoder_loss_kernel(
    xsel_ref,    # (TBp, Dw+SEL) bf16  [word emb | batch one-hot], time-major (t,b)
    h0_ref,      # (Bp, H)  f32   encoder hidden state (batch padded)
    gu_ref,      # (Bp, A)  f32   gamma_user
    gi_ref,      # (Bp, A)  f32   gamma_item
    w10a_ref,    # (1, A)   f32   linear_eq_10 weight, value (gamma) part
    w10h_ref,    # (1, H)   f32   linear_eq_10 weight, query (hidden) part
    wx_ref,      # (Dw+SEL, 3H) bf16  [[W_ir|W_iz|W_in]; zeros]
    wh_ref,      # (H, 3H)  bf16      [W_hr|W_hz|W_hn]
    wout_ref,    # (H+A+Dw+SEL, V) bf16 fused output weight (eq-12 folded in)
    tgt_ref,     # (TBp, 1) int32 targets (PAD on padded rows)
    loss_ref,    # out (TBp, 1) f32 per-element CE loss (0 at ignored)
    obj_ref,     # out (1, 1)   f32 mean CE over valid targets
):
    f32 = jnp.float32
    bf16 = jnp.bfloat16
    H = conf.hidden_dim
    Bp = h0_ref.shape[0]
    TBp = xsel_ref.shape[0]
    T = TBp // Bp

    # --- x-side gate projections for the whole sequence: one batched matmul ---
    xsel = xsel_ref[...]                                          # (TBp, Dw+SEL) bf16
    xproj = jnp.dot(xsel, wx_ref[...],
                    preferred_element_type=f32)                   # (TBp, 3H)

    gu = gu_ref[...]
    gi = gi_ref[...]
    w10a = w10a_ref[...]
    w10h = w10h_ref[...]
    wh = wh_ref[...]

    # --- loop-invariant attention terms (gamma part of linear_eq_10) ---
    cu = jnp.sum(gu * w10a, axis=1, keepdims=True)                # (Bp, 1)
    ci = jnp.sum(gi * w10a, axis=1, keepdims=True)

    h = h0_ref[...]                                               # (Bp, H) f32
    hb = h.astype(bf16)                                           # bf16 MXU operand
    h_list = []
    a2_list = []
    for t in range(T):   # T=8, unrolled at trace time; only h is sequential
        row = t * Bp
        xp = xproj[row:row + Bp, :]                               # (Bp, 3H), 8-row tile

        # single per-step MXU push: h @ [W_hr|W_hz|W_hn]
        hp = jnp.dot(hb, wh, preferred_element_type=f32)          # (Bp, 3H)

        # full-vreg sigmoid; only the r|z lanes are consumed
        s = jax.nn.sigmoid(xp + hp)
        r = s[:, 0:H]
        z = s[:, H:2 * H]
        n = jnp.tanh(xp[:, 2 * H:3 * H] + r * hp[:, 2 * H:3 * H])
        h = (1.0 - z) * n + z * h                                 # post-update hidden
        hb = h.astype(bf16)

        # _attention over value = stack([gamma_u, gamma_i]) with mask = ones
        eh = jnp.sum(h * w10h, axis=1, keepdims=True)             # (Bp, 1)
        a_u = jnp.exp(jnp.tanh(cu + eh))
        a_i = jnp.exp(jnp.tanh(ci + eh))
        inv = pl.reciprocal(a_u + a_i + 1e-6, approx=True)
        a2 = (a_u * inv) * gu + (a_i * inv) * gi                  # (Bp, A)

        h_list.append(hb)
        a2_list.append(a2.astype(bf16))

    # --- vreg-resident feature assembly, K padded to a full 128 lanes ---
    feats = jnp.concatenate(
        [jnp.concatenate(h_list, axis=0),                         # (TBp, H)
         jnp.concatenate(a2_list, axis=0),                        # (TBp, A)
         xsel],                                                   # (TBp, Dw+SEL)
        axis=1)                                                   # (TBp, 128) bf16

    # --- single (TBp,128)@(128,V) vocab matmul (eq-13 + folded eq-12/aspect) ---
    logits = jnp.dot(feats, wout_ref[...],
                     preferred_element_type=f32)                  # (TBp, V)

    # --- fused cross-entropy (ignore_index=PAD) ---
    tgt = tgt_ref[...]                                            # (TBp, 1)
    m = jnp.max(logits, axis=-1, keepdims=True)
    lse = m + jnp.log(jnp.sum(jnp.exp(logits - m), axis=-1, keepdims=True))
    lane = jax.lax.broadcasted_iota(jnp.int32, logits.shape, 1)
    tgt_logit = jnp.sum(jnp.where(lane == tgt, logits, 0.0),
                        axis=-1, keepdims=True)
    valid = (tgt != PAD).astype(f32)
    loss = (lse - tgt_logit) * valid
    loss_ref[...] = loss

    loss_sum = jnp.sum(loss, axis=0, keepdims=True)               # (1, 1)
    valid_sum = jnp.sum(valid, axis=0, keepdims=True)
    # TODO(synk): PyTorch CE would return NaN if *every* target is PAD; we clamp to 0.
    obj_ref[...] = loss_sum * pl.reciprocal(jnp.maximum(valid_sum, 1.0),
                                            approx=False)


def run_decoder_loss(xsel, h0, gu, gi, w10a, w10h, wx, wh, wout, tgt2d):
    TBp = xsel.shape[0]
    inputs = [xsel, h0, gu, gi, w10a, w10h, wx, wh, wout, tgt2d]

    def full_spec(arr):
        nd = arr.ndim
        return pl.BlockSpec(arr.shape, lambda i, _nd=nd: (0,) * _nd)

    cost = pl.CostEstimate(flops=6_000_000, transcendentals=30_000,
                           bytes_accessed=160_000)

    loss, obj = pl.pallas_call(
        fused_decoder_loss_kernel,
        out_shape=(jax.ShapeDtypeStruct((TBp, 1), jnp.float32),
                   jax.ShapeDtypeStruct((1, 1), jnp.float32)),
        grid_spec=pltpu.PrefetchScalarGridSpec(
            num_scalar_prefetch=0,
            grid=(1,),
            in_specs=[full_spec(a) for a in inputs],
            out_specs=[pl.BlockSpec((TBp, 1), lambda i: (0, 0)),
                       pl.BlockSpec((1, 1), lambda i: (0, 0))],
        ),
        compiler_params=pltpu.CompilerParams(
            dimension_semantics=("arbitrary",)),
        cost_estimate=cost,
    )(*inputs)
    return loss, obj


# ----------------------------------------------------------------------------
# Parameters (deterministic synthetic init; biases zero per module reinit()).
# ----------------------------------------------------------------------------
def init_params(key):
    keys = jax.random.split(key, 24)
    it = iter(range(24))

    def xav(shape):
        fan_in, fan_out = shape[0], shape[-1]
        scale = jnp.sqrt(2.0 / (fan_in + fan_out))
        return (jax.random.normal(keys[next(it)], shape) * scale).astype(jnp.float32)

    A, S, H, Dw, V = (conf.att_dim, conf.aspect_dim, conf.hidden_dim,
                      conf.word_dim, conf.vocab_sz)
    p = {
        "word_emb":   xav((V, Dw)),
        "gamma_user": xav((conf.num_users, A)),
        "gamma_item": xav((conf.num_items, A)),
        "beta_user":  xav((conf.num_users, S)),
        "beta_item":  xav((conf.num_items, S)),
        "W3": xav((2 * A, H)),   # encoder linear_eq_3 (input-major)
        "W4": xav((2 * S, H)),   # encoder linear_eq_4
        # decoder GRU (gate-split, input-major)
        "W_ir": xav((Dw, H)), "W_iz": xav((Dw, H)), "W_in": xav((Dw, H)),
        "W_hr": xav((H, H)),  "W_hz": xav((H, H)),  "W_hn": xav((H, H)),
        # linear_eq_10 split over cat([value, query])
        "w10_att": xav((1, A)), "w10_h": xav((1, H)),
        # linear_eq_11 split over cat([beta_u, beta_i])
        "W11_u": xav((S, S)), "W11_i": xav((S, S)),
        # linear_eq_12 split over cat([s_ui, hidden, input_vector])
        "W12_s": xav((S, S)), "W12_h": xav((H, S)), "W12_x": xav((Dw, S)),
        # linear_eq_13 split over cat([hidden, a_2_t])
        "W13_h": xav((H, V)), "W13_a": xav((A, V)),
    }
    return p


# ----------------------------------------------------------------------------
# Static weight fusion — done ONCE outside the jitted per-call path.
# ----------------------------------------------------------------------------
def build_fused_weights(p, review_aspect_mask):
    f32 = jnp.float32
    bf16 = jnp.bfloat16
    hi = jax.lax.Precision.HIGHEST
    Dw, H = conf.word_dim, conf.hidden_dim

    aspect_T = review_aspect_mask.T.astype(f32)                    # (S, V) dense
    # gate weights: [W_ir|W_iz|W_in], padded with SEL zero rows so the
    # [x | one-hot] input can be used directly (one-hot contributes nothing).
    wx = jnp.concatenate([p["W_ir"], p["W_iz"], p["W_in"]], axis=1)
    wx = jnp.concatenate([wx, jnp.zeros((SEL, 3 * H), f32)], axis=0).astype(bf16)
    wh = jnp.concatenate([p["W_hr"], p["W_hz"], p["W_hn"]], axis=1).astype(bf16)
    # fused output weight, static part (eq-13 + eq-12 folded through aspect_T):
    #   rows [0:H]        -> multiplied by h     : W13_h + W12_h @ aspect_T
    #   rows [H:H+A]      -> multiplied by a2    : W13_a
    #   rows [H+A:H+A+Dw] -> multiplied by x     : W12_x @ aspect_T
    wout_static = jnp.concatenate(
        [p["W13_h"] + jnp.dot(p["W12_h"], aspect_T, precision=hi),
         p["W13_a"],
         jnp.dot(p["W12_x"], aspect_T, precision=hi)],
        axis=0).astype(bf16)                                       # (H+A+Dw, V)
    # eq-12 contribution of s_ui, pre-multiplied by aspect_T
    w12s_asp = jnp.dot(p["W12_s"], aspect_T, precision=hi)         # (S, V) f32
    return {"wx": wx, "wh": wh, "wout_static": wout_static, "w12s_asp": w12s_asp}


# ----------------------------------------------------------------------------
# Full forward (encoder + embedding lookups + batch padding are JAX glue;
# the whole decoder time loop + CE is a single Pallas kernel).
# ----------------------------------------------------------------------------
def expansion_net_forward(p, fused, user, item, review_input, review_target):
    f32 = jnp.float32
    bf16 = jnp.bfloat16
    Dw = conf.word_dim

    # encoder (runs once; tiny) -- plain JAX glue
    gu = p["gamma_user"][user]                    # (B, att)
    gi = p["gamma_item"][item]
    bu = p["beta_user"][user]                     # (B, asp)
    bi = p["beta_item"][item]
    u_vec = jnp.tanh(jnp.concatenate([gu, gi], axis=1) @ p["W3"])
    v_vec = jnp.tanh(jnp.concatenate([bu, bi], axis=1) @ p["W4"])
    h0 = u_vec + v_vec                            # (B, H)

    # loop-invariant eq-11 / eq-12 contribution of s_ui (per batch row)
    s_ui = bu @ p["W11_u"] + bi @ p["W11_i"]      # (B, S)
    s12_asp = s_ui @ fused["w12s_asp"]            # (B, V)

    T, B = review_input.shape
    Bp = BP
    pad_b = Bp - B

    def pad_rows(x):
        return jnp.pad(x, ((0, pad_b), (0, 0)))

    h0p, gup, gip = pad_rows(h0), pad_rows(gu), pad_rows(gi)

    # word embeddings, time-major with padded batch; dropout = identity
    x_emb = p["word_emb"][review_input]                          # (T, B, Dw)
    x_emb = jnp.pad(x_emb, ((0, 0), (0, pad_b), (0, 0)))
    x_emb = x_emb.reshape(T * Bp, Dw).astype(bf16)
    # batch one-hot selector (picks the per-batch s12 row out of wout)
    sel = jax.nn.one_hot(jnp.arange(T * Bp) % Bp, SEL, dtype=bf16)
    xsel = jnp.concatenate([x_emb, sel], axis=1)                 # (T*Bp, Dw+SEL)

    tgt = jnp.pad(review_target, ((0, 0), (0, pad_b)), constant_values=PAD)
    tgt2d = tgt.reshape(T * Bp, 1).astype(jnp.int32)

    # dynamic tail of the fused output weight: per-batch s_ui@W12_s@aspect_T
    s12_rows = jnp.pad(s12_asp, ((0, SEL - B), (0, 0))).astype(bf16)   # (SEL, V)
    wout = jnp.concatenate([fused["wout_static"], s12_rows], axis=0)   # (128, V)

    loss_p, obj = run_decoder_loss(
        xsel, h0p, gup, gip, p["w10_att"], p["w10_h"],
        fused["wx"], fused["wh"], wout, tgt2d)

    # un-pad: (T*Bp,1) -> (T,Bp) -> (T,B) -> (T*B,)
    out_loss = loss_p.reshape(T, Bp)[:, :B].reshape(T * B)
    return out_loss, obj[0, 0]


if __name__ == "__main__":
    key = jax.random.PRNGKey(0)
    k_param, k_user, k_item, k_in, k_tgt, k_mask = jax.random.split(key, 6)

    params = init_params(k_param)

    B = 2
    T = conf.rev_len  # 8
    user = jax.random.randint(k_user, (B,), 0, conf.num_users)
    item = jax.random.randint(k_item, (B,), 0, conf.num_items)
    review_input = jax.random.randint(k_in, (T, B), 1, conf.vocab_sz)
    review_target = jax.random.randint(k_tgt, (T, B), 0, conf.vocab_sz)
    # dense stand-in for the sparse review_aspect_mask: (vocab_sz, aspect_dim)
    review_aspect_mask = (
        jax.random.uniform(k_mask, (conf.vocab_sz, conf.aspect_dim)) < 0.1
    ).astype(jnp.float32)

    # static bf16 weight fusion hoisted out of the per-call path
    fused = build_fused_weights(params, review_aspect_mask)

    fwd = jax.jit(expansion_net_forward)
    out_loss, obj = fwd(params, fused, user, item, review_input, review_target)
    jax.block_until_ready((out_loss, obj))

    assert out_loss.shape == (T * B,)
    assert obj.shape == ()
    assert bool(jnp.isfinite(obj))
    print("KERNEL_OK")
</pallas_src>

<mosaic_0001>
module attributes {stable_mosaic.version = 11 : i64} {
  func.func @fused_decoder_loss_kernel(%arg0: i32, %arg1: memref<64x64xbf16, #tpu.memory_space<vmem>>, %arg2: memref<8x32xf32, #tpu.memory_space<vmem>>, %arg3: memref<8x32xf32, #tpu.memory_space<vmem>>, %arg4: memref<8x32xf32, #tpu.memory_space<vmem>>, %arg5: memref<1x32xf32, #tpu.memory_space<vmem>>, %arg6: memref<1x32xf32, #tpu.memory_space<vmem>>, %arg7: memref<64x96xbf16, #tpu.memory_space<vmem>>, %arg8: memref<32x96xbf16, #tpu.memory_space<vmem>>, %arg9: memref<128x256xbf16, #tpu.memory_space<vmem>>, %arg10: memref<64x1xi32, #tpu.memory_space<vmem>>, %arg11: memref<64x1xf32, #tpu.memory_space<vmem>>, %arg12: memref<1x1xf32, #tpu.memory_space<vmem>>) attributes {dimension_semantics = [#tpu.dimension_semantics<arbitrary>], iteration_bounds = array<i64: 1>, scalar_prefetch = 0 : i64, scratch_operands = 0 : i64, tpu.core_type = #tpu.core_type<tc>, window_params = [{pipeline_mode = #tpu.pipeline_mode<synchronous>, transform_indices = @transform_0, window_bounds = array<i64: 64, 64>}, {pipeline_mode = #tpu.pipeline_mode<synchronous>, transform_indices = @transform_1, window_bounds = array<i64: 8, 32>}, {pipeline_mode = #tpu.pipeline_mode<synchronous>, transform_indices = @transform_2, window_bounds = array<i64: 8, 32>}, {pipeline_mode = #tpu.pipeline_mode<synchronous>, transform_indices = @transform_3, window_bounds = array<i64: 8, 32>}, {pipeline_mode = #tpu.pipeline_mode<synchronous>, transform_indices = @transform_4, window_bounds = array<i64: 1, 32>}, {pipeline_mode = #tpu.pipeline_mode<synchronous>, transform_indices = @transform_5, window_bounds = array<i64: 1, 32>}, {pipeline_mode = #tpu.pipeline_mode<synchronous>, transform_indices = @transform_6, window_bounds = array<i64: 64, 96>}, {pipeline_mode = #tpu.pipeline_mode<synchronous>, transform_indices = @transform_7, window_bounds = array<i64: 32, 96>}, {pipeline_mode = #tpu.pipeline_mode<synchronous>, transform_indices = @transform_8, window_bounds = array<i64: 128, 256>}, {pipeline_mode = #tpu.pipeline_mode<synchronous>, transform_indices = @transform_9, window_bounds = array<i64: 64, 1>}, {pipeline_mode = #tpu.pipeline_mode<synchronous>, transform_indices = @transform_10, window_bounds = array<i64: 64, 1>}, {pipeline_mode = #tpu.pipeline_mode<synchronous>, transform_indices = @transform_11, window_bounds = array<i64: 1, 1>}]} {
    %c0 = arith.constant 0 : index
    %c0_0 = arith.constant 0 : index
    %0 = vector.load %arg1[%c0, %c0_0] : memref<64x64xbf16, #tpu.memory_space<vmem>>, vector<64x64xbf16>
    %c0_1 = arith.constant 0 : index
    %c0_2 = arith.constant 0 : index
    %1 = vector.load %arg7[%c0_1, %c0_2] : memref<64x96xbf16, #tpu.memory_space<vmem>>, vector<64x96xbf16>
    %cst = arith.constant dense<0.000000e+00> : vector<64x96xf32>
    %2 = tpu.matmul %0, %1, %cst {dimension_numbers = #tpu.dot_dimension_numbers<[1], [0], [0], [1], [0, 0, 1, 1], [], []>} : vector<64x64xbf16>, vector<64x96xbf16>, vector<64x96xf32> -> vector<64x96xf32>
    %c0_3 = arith.constant 0 : index
    %c0_4 = arith.constant 0 : index
    %3 = vector.load %arg3[%c0_3, %c0_4] : memref<8x32xf32, #tpu.memory_space<vmem>>, vector<8x32xf32>
    %c0_5 = arith.constant 0 : index
    %c0_6 = arith.constant 0 : index
    %4 = vector.load %arg4[%c0_5, %c0_6] : memref<8x32xf32, #tpu.memory_space<vmem>>, vector<8x32xf32>
    %c0_7 = arith.constant 0 : index
    %c0_8 = arith.constant 0 : index
    %5 = vector.load %arg5[%c0_7, %c0_8] : memref<1x32xf32, #tpu.memory_space<vmem>>, vector<1x32xf32>
    %c0_9 = arith.constant 0 : index
    %c0_10 = arith.constant 0 : index
    %6 = vector.load %arg6[%c0_9, %c0_10] : memref<1x32xf32, #tpu.memory_space<vmem>>, vector<1x32xf32>
    %c0_11 = arith.constant 0 : index
    %c0_12 = arith.constant 0 : index
    %7 = vector.load %arg8[%c0_11, %c0_12] : memref<32x96xbf16, #tpu.memory_space<vmem>>, vector<32x96xbf16>
    %8 = vector.broadcast %5 : vector<1x32xf32> to vector<8x32xf32>
    %9 = arith.mulf %3, %8 : vector<8x32xf32>
    %cst_13 = arith.constant dense<0.000000e+00> : vector<8xf32>
    %10 = vector.multi_reduction <add>, %9, %cst_13 [1] : vector<8x32xf32> to vector<8xf32>
    %11 = vector.shape_cast %10 : vector<8xf32> to vector<8x1xf32>
    %12 = vector.broadcast %5 : vector<1x32xf32> to vector<8x32xf32>
    %13 = arith.mulf %4, %12 : vector<8x32xf32>
    %cst_14 = arith.constant dense<0.000000e+00> : vector<8xf32>
    %14 = vector.multi_reduction <add>, %13, %cst_14 [1] : vector<8x32xf32> to vector<8xf32>
    %15 = vector.shape_cast %14 : vector<8xf32> to vector<8x1xf32>
    %c0_15 = arith.constant 0 : index
    %c0_16 = arith.constant 0 : index
    %16 = vector.load %arg2[%c0_15, %c0_16] : memref<8x32xf32, #tpu.memory_space<vmem>>, vector<8x32xf32>
    %17 = arith.truncf %16 : vector<8x32xf32> to vector<8x32xbf16>
    %18 = vector.extract_strided_slice %2 {offsets = [0, 0], sizes = [8, 96], strides = [1, 1]} : vector<64x96xf32> to vector<8x96xf32>
    %cst_17 = arith.constant dense<0.000000e+00> : vector<8x96xf32>
    %19 = tpu.matmul %17, %7, %cst_17 {dimension_numbers = #tpu.dot_dimension_numbers<[1], [0], [0], [1], [0, 0, 1, 1], [], []>} : vector<8x32xbf16>, vector<32x96xbf16>, vector<8x96xf32> -> vector<8x96xf32>
    %20 = arith.addf %18, %19 : vector<8x96xf32>
    %21 = arith.negf %20 : vector<8x96xf32>
    %22 = math.exp %21 : vector<8x96xf32>
    %cst_18 = arith.constant 1.000000e+00 : f32
    %23 = vector.broadcast %cst_18 : f32 to vector<8x96xf32>
    %24 = arith.addf %23, %22 : vector<8x96xf32>
    %25 = arith.divf %23, %24 : vector<8x96xf32>
    %26 = vector.extract_strided_slice %25 {offsets = [0, 0], sizes = [8, 32], strides = [1, 1]} : vector<8x96xf32> to vector<8x32xf32>
    %27 = vector.extract_strided_slice %25 {offsets = [0, 32], sizes = [8, 32], strides = [1, 1]} : vector<8x96xf32> to vector<8x32xf32>
    %28 = vector.extract_strided_slice %18 {offsets = [0, 64], sizes = [8, 32], strides = [1, 1]} : vector<8x96xf32> to vector<8x32xf32>
    %29 = vector.extract_strided_slice %19 {offsets = [0, 64], sizes = [8, 32], strides = [1, 1]} : vector<8x96xf32> to vector<8x32xf32>
    %30 = arith.mulf %26, %29 : vector<8x32xf32>
    %31 = arith.addf %28, %30 : vector<8x32xf32>
    %32 = math.tanh %31 : vector<8x32xf32>
    %cst_19 = arith.constant 1.000000e+00 : f32
    %33 = vector.broadcast %cst_19 : f32 to vector<8x32xf32>
    %34 = arith.subf %33, %27 : vector<8x32xf32>
    %35 = arith.mulf %34, %32 : vector<8x32xf32>
    %36 = arith.mulf %27, %16 : vector<8x32xf32>
    %37 = arith.addf %35, %36 : vector<8x32xf32>
    %38 = arith.truncf %37 : vector<8x32xf32> to vector<8x32xbf16>
    %39 = vector.broadcast %6 : vector<1x32xf32> to vector<8x32xf32>
    %40 = arith.mulf %37, %39 : vector<8x32xf32>
    %cst_20 = arith.constant dense<0.000000e+00> : vector<8xf32>
    %41 = vector.multi_reduction <add>, %40, %cst_20 [1] : vector<8x32xf32> to vector<8xf32>
    %42 = vector.shape_cast %41 : vector<8xf32> to vector<8x1xf32>
    %43 = arith.addf %11, %42 : vector<8x1xf32>
    %44 = math.tanh %43 : vector<8x1xf32>
    %45 = math.exp %44 : vector<8x1xf32>
    %46 = arith.addf %15, %42 : vector<8x1xf32>
    %47 = math.tanh %46 : vector<8x1xf32>
    %48 = math.exp %47 : vector<8x1xf32>
    %49 = arith.addf %45, %48 : vector<8x1xf32>
    %cst_21 = arith.constant 9.99999997E-7 : f32
    %50 = vector.broadcast %cst_21 : f32 to vector<8x1xf32>
    %51 = arith.addf %49, %50 : vector<8x1xf32>
    %52 = tpu.reciprocal %51 {approx = true} : vector<8x1xf32> -> vector<8x1xf32>
    %53 = arith.mulf %45, %52 : vector<8x1xf32>
    %54 = vector.broadcast %53 : vector<8x1xf32> to vector<8x32xf32>
    %55 = arith.mulf %54, %3 : vector<8x32xf32>
    %56 = arith.mulf %48, %52 : vector<8x1xf32>
    %57 = vector.broadcast %56 : vector<8x1xf32> to vector<8x32xf32>
    %58 = arith.mulf %57, %4 : vector<8x32xf32>
    %59 = arith.addf %55, %58 : vector<8x32xf32>
    %60 = arith.truncf %59 : vector<8x32xf32> to vector<8x32xbf16>
    %61 = vector.extract_strided_slice %2 {offsets = [8, 0], sizes = [8, 96], strides = [1, 1]} : vector<64x96xf32> to vector<8x96xf32>
    %cst_22 = arith.constant dense<0.000000e+00> : vector<8x96xf32>
    %62 = tpu.matmul %38, %7, %cst_22 {dimension_numbers = #tpu.dot_dimension_numbers<[1], [0], [0], [1], [0, 0, 1, 1], [], []>} : vector<8x32xbf16>, vector<32x96xbf16>, vector<8x96xf32> -> vector<8x96xf32>
    %63 = arith.addf %61, %62 : vector<8x96xf32>
    %64 = arith.negf %63 : vector<8x96xf32>
    %65 = math.exp %64 : vector<8x96xf32>
    %cst_23 = arith.constant 1.000000e+00 : f32
    %66 = vector.broadcast %cst_23 : f32 to vector<8x96xf32>
    %67 = arith.addf %66, %65 : vector<8x96xf32>
    %68 = arith.divf %66, %67 : vector<8x96xf32>
    %69 = vector.extract_strided_slice %68 {offsets = [0, 0], sizes = [8, 32], strides = [1, 1]} : vector<8x96xf32> to vector<8x32xf32>
    %70 = vector.extract_strided_slice %68 {offsets = [0, 32], sizes = [8, 32], strides = [1, 1]} : vector<8x96xf32> to vector<8x32xf32>
    %71 = vector.extract_strided_slice %61 {offsets = [0, 64], sizes = [8, 32], strides = [1, 1]} : vector<8x96xf32> to vector<8x32xf32>
    %72 = vector.extract_strided_slice %62 {offsets = [0, 64], sizes = [8, 32], strides = [1, 1]} : vector<8x96xf32> to vector<8x32xf32>
    %73 = arith.mulf %69, %72 : vector<8x32xf32>
    %74 = arith.addf %71, %73 : vector<8x32xf32>
    %75 = math.tanh %74 : vector<8x32xf32>
    %cst_24 = arith.constant 1.000000e+00 : f32
    %76 = vector.broadcast %cst_24 : f32 to vector<8x32xf32>
    %77 = arith.subf %76, %70 : vector<8x32xf32>
    %78 = arith.mulf %77, %75 : vector<8x32xf32>
    %79 = arith.mulf %70, %37 : vector<8x32xf32>
    %80 = arith.addf %78, %79 : vector<8x32xf32>
    %81 = arith.truncf %80 : vector<8x32xf32> to vector<8x32xbf16>
    %82 = vector.broadcast %6 : vector<1x32xf32> to vector<8x32xf32>
    %83 = arith.mulf %80, %82 : vector<8x32xf32>
    %cst_25 = arith.constant dense<0.000000e+00> : vector<8xf32>
    %84 = vector.multi_reduction <add>, %83, %cst_25 [1] : vector<8x32xf32> to vector<8xf32>
    %85 = vector.shape_cast %84 : vector<8xf32> to vector<8x1xf32>
    %86 = arith.addf %11, %85 : vector<8x1xf32>
    %87 = math.tanh %86 : vector<8x1xf32>
    %88 = math.exp %87 : vector<8x1xf32>
    %89 = arith.addf %15, %85 : vector<8x1xf32>
    %90 = math.tanh %89 : vector<8x1xf32>
    %91 = math.exp %90 : vector<8x1xf32>
    %92 = arith.addf %88, %91 : vector<8x1xf32>
    %cst_26 = arith.constant 9.99999997E-7 : f32
    %93 = vector.broadcast %cst_26 : f32 to vector<8x1xf32>
    %94 = arith.addf %92, %93 : vector<8x1xf32>
    %95 = tpu.reciprocal %94 {approx = true} : vector<8x1xf32> -> vector<8x1xf32>
    %96 = arith.mulf %88, %95 : vector<8x1xf32>
    %97 = vector.broadcast %96 : vector<8x1xf32> to vector<8x32xf32>
    %98 = arith.mulf %97, %3 : vector<8x32xf32>
    %99 = arith.mulf %91, %95 : vector<8x1xf32>
    %100 = vector.broadcast %99 : vector<8x1xf32> to vector<8x32xf32>
    %101 = arith.mulf %100, %4 : vector<8x32xf32>
    %102 = arith.addf %98, %101 : vector<8x32xf32>
    %103 = arith.truncf %102 : vector<8x32xf32> to vector<8x32xbf16>
    %104 = vector.extract_strided_slice %2 {offsets = [16, 0], sizes = [8, 96], strides = [1, 1]} : vector<64x96xf32> to vector<8x96xf32>
    %cst_27 = arith.constant dense<0.000000e+00> : vector<8x96xf32>
    %105 = tpu.matmul %81, %7, %cst_27 {dimension_numbers = #tpu.dot_dimension_numbers<[1], [0], [0], [1], [0, 0, 1, 1], [], []>} : vector<8x32xbf16>, vector<32x96xbf16>, vector<8x96xf32> -> vector<8x96xf32>
    %106 = arith.addf %104, %105 : vector<8x96xf32>
    %107 = arith.negf %106 : vector<8x96xf32>
    %108 = math.exp %107 : vector<8x96xf32>
    %cst_28 = arith.constant 1.000000e+00 : f32
    %109 = vector.broadcast %cst_28 : f32 to vector<8x96xf32>
    %110 = arith.addf %109, %108 : vector<8x96xf32>
    %111 = arith.divf %109, %110 : vector<8x96xf32>
    %112 = vector.extract_strided_slice %111 {offsets = [0, 0], sizes = [8, 32], strides = [1, 1]} : vector<8x96xf32> to vector<8x32xf32>
    %113 = vector.extract_strided_slice %111 {offsets = [0, 32], sizes = [8, 32], strides = [1, 1]} : vector<8x96xf32> to vector<8x32xf32>
    %114 = vector.extract_strided_slice %104 {offsets = [0, 64], sizes = [8, 32], strides = [1, 1]} : vector<8x96xf32> to vector<8x32xf32>
    %115 = vector.extract_strided_slice %105 {offsets = [0, 64], sizes = [8, 32], strides = [1, 1]} : vector<8x96xf32> to vector<8x32xf32>
    %116 = arith.mulf %112, %115 : vector<8x32xf32>
    %117 = arith.addf %114, %116 : vector<8x32xf32>
    %118 = math.tanh %117 : vector<8x32xf32>
    %cst_29 = arith.constant 1.000000e+00 : f32
    %119 = vector.broadcast %cst_29 : f32 to vector<8x32xf32>
    %120 = arith.subf %119, %113 : vector<8x32xf32>
    %121 = arith.mulf %120, %118 : vector<8x32xf32>
    %122 = arith.mulf %113, %80 : vector<8x32xf32>
    %123 = arith.addf %121, %122 : vector<8x32xf32>
    %124 = arith.truncf %123 : vector<8x32xf32> to vector<8x32xbf16>
    %125 = vector.broadcast %6 : vector<1x32xf32> to vector<8x32xf32>
    %126 = arith.mulf %123, %125 : vector<8x32xf32>
    %cst_30 = arith.constant dense<0.000000e+00> : vector<8xf32>
    %127 = vector.multi_reduction <add>, %126, %cst_30 [1] : vector<8x32xf32> to vector<8xf32>
    %128 = vector.shape_cast %127 : vector<8xf32> to vector<8x1xf32>
    %129 = arith.addf %11, %128 : vector<8x1xf32>
    %130 = math.tanh %129 : vector<8x1xf32>
    %131 = math.exp %130 : vector<8x1xf32>
    %132 = arith.addf %15, %128 : vector<8x1xf32>
    %133 = math.tanh %132 : vector<8x1xf32>
    %134 = math.exp %133 : vector<8x1xf32>
    %135 = arith.addf %131, %134 : vector<8x1xf32>
    %cst_31 = arith.constant 9.99999997E-7 : f32
    %136 = vector.broadcast %cst_31 : f32 to vector<8x1xf32>
    %137 = arith.addf %135, %136 : vector<8x1xf32>
    %138 = tpu.reciprocal %137 {approx = true} : vector<8x1xf32> -> vector<8x1xf32>
    %139 = arith.mulf %131, %138 : vector<8x1xf32>
    %140 = vector.broadcast %139 : vector<8x1xf32> to vector<8x32xf32>
    %141 = arith.mulf %140, %3 : vector<8x32xf32>
    %142 = arith.mulf %134, %138 : vector<8x1xf32>
    %143 = vector.broadcast %142 : vector<8x1xf32> to vector<8x32xf32>
    %144 = arith.mulf %143, %4 : vector<8x32xf32>
    %145 = arith.addf %141, %144 : vector<8x32xf32>
    %146 = arith.truncf %145 : vector<8x32xf32> to vector<8x32xbf16>
    %147 = vector.extract_strided_slice %2 {offsets = [24, 0], sizes = [8, 96], strides = [1, 1]} : vector<64x96xf32> to vector<8x96xf32>
    %cst_32 = arith.constant dense<0.000000e+00> : vector<8x96xf32>
    %148 = tpu.matmul %124, %7, %cst_32 {dimension_numbers = #tpu.dot_dimension_numbers<[1], [0], [0], [1], [0, 0, 1, 1], [], []>} : vector<8x32xbf16>, vector<32x96xbf16>, vector<8x96xf32> -> vector<8x96xf32>
    %149 = arith.addf %147, %148 : vector<8x96xf32>
    %150 = arith.negf %149 : vector<8x96xf32>
    %151 = math.exp %150 : vector<8x96xf32>
    %cst_33 = arith.constant 1.000000e+00 : f32
    %152 = vector.broadcast %cst_33 : f32 to vector<8x96xf32>
    %153 = arith.addf %152, %151 : vector<8x96xf32>
    %154 = arith.divf %152, %153 : vector<8x96xf32>
    %155 = vector.extract_strided_slice %154 {offsets = [0, 0], sizes = [8, 32], strides = [1, 1]} : vector<8x96xf32> to vector<8x32xf32>
    %156 = vector.extract_strided_slice %154 {offsets = [0, 32], sizes = [8, 32], strides = [1, 1]} : vector<8x96xf32> to vector<8x32xf32>
    %157 = vector.extract_strided_slice %147 {offsets = [0, 64], sizes = [8, 32], strides = [1, 1]} : vector<8x96xf32> to vector<8x32xf32>
    %158 = vector.extract_strided_slice %148 {offsets = [0, 64], sizes = [8, 32], strides = [1, 1]} : vector<8x96xf32> to vector<8x32xf32>
    %159 = arith.mulf %155, %158 : vector<8x32xf32>
    %160 = arith.addf %157, %159 : vector<8x32xf32>
    %161 = math.tanh %160 : vector<8x32xf32>
    %cst_34 = arith.constant 1.000000e+00 : f32
    %162 = vector.broadcast %cst_34 : f32 to vector<8x32xf32>
    %163 = arith.subf %162, %156 : vector<8x32xf32>
    %164 = arith.mulf %163, %161 : vector<8x32xf32>
    %165 = arith.mulf %156, %123 : vector<8x32xf32>
    %166 = arith.addf %164, %165 : vector<8x32xf32>
    %167 = arith.truncf %166 : vector<8x32xf32> to vector<8x32xbf16>
    %168 = vector.broadcast %6 : vector<1x32xf32> to vector<8x32xf32>
    %169 = arith.mulf %166, %168 : vector<8x32xf32>
    %cst_35 = arith.constant dense<0.000000e+00> : vector<8xf32>
    %170 = vector.multi_reduction <add>, %169, %cst_35 [1] : vector<8x32xf32> to vector<8xf32>
    %171 = vector.shape_cast %170 : vector<8xf32> to vector<8x1xf32>
    %172 = arith.addf %11, %171 : vector<8x1xf32>
    %173 = math.tanh %172 : vector<8x1xf32>
    %174 = math.exp %173 : vector<8x1xf32>
    %175 = arith.addf %15, %171 : vector<8x1xf32>
    %176 = math.tanh %175 : vector<8x1xf32>
    %177 = math.exp %176 : vector<8x1xf32>
    %178 = arith.addf %174, %177 : vector<8x1xf32>
    %cst_36 = arith.constant 9.99999997E-7 : f32
    %179 = vector.broadcast %cst_36 : f32 to vector<8x1xf32>
    %180 = arith.addf %178, %179 : vector<8x1xf32>
    %181 = tpu.reciprocal %180 {approx = true} : vector<8x1xf32> -> vector<8x1xf32>
    %182 = arith.mulf %174, %181 : vector<8x1xf32>
    %183 = vector.broadcast %182 : vector<8x1xf32> to vector<8x32xf32>
    %184 = arith.mulf %183, %3 : vector<8x32xf32>
    %185 = arith.mulf %177, %181 : vector<8x1xf32>
    %186 = vector.broadcast %185 : vector<8x1xf32> to vector<8x32xf32>
    %187 = arith.mulf %186, %4 : vector<8x32xf32>
    %188 = arith.addf %184, %187 : vector<8x32xf32>
    %189 = arith.truncf %188 : vector<8x32xf32> to vector<8x32xbf16>
    %190 = vector.extract_strided_slice %2 {offsets = [32, 0], sizes = [8, 96], strides = [1, 1]} : vector<64x96xf32> to vector<8x96xf32>
    %cst_37 = arith.constant dense<0.000000e+00> : vector<8x96xf32>
    %191 = tpu.matmul %167, %7, %cst_37 {dimension_numbers = #tpu.dot_dimension_numbers<[1], [0], [0], [1], [0, 0, 1, 1], [], []>} : vector<8x32xbf16>, vector<32x96xbf16>, vector<8x96xf32> -> vector<8x96xf32>
    %192 = arith.addf %190, %191 : vector<8x96xf32>
    %193 = arith.negf %192 : vector<8x96xf32>
    %194 = math.exp %193 : vector<8x96xf32>
    %cst_38 = arith.constant 1.000000e+00 : f32
    %195 = vector.broadcast %cst_38 : f32 to vector<8x96xf32>
    %196 = arith.addf %195, %194 : vector<8x96xf32>
    %197 = arith.divf %195, %196 : vector<8x96xf32>
    %198 = vector.extract_strided_slice %197 {offsets = [0, 0], sizes = [8, 32], strides = [1, 1]} : vector<8x96xf32> to vector<8x32xf32>
    %199 = vector.extract_strided_slice %197 {offsets = [0, 32], sizes = [8, 32], strides = [1, 1]} : vector<8x96xf32> to vector<8x32xf32>
    %200 = vector.extract_strided_slice %190 {offsets = [0, 64], sizes = [8, 32], strides = [1, 1]} : vector<8x96xf32> to vector<8x32xf32>
    %201 = vector.extract_strided_slice %191 {offsets = [0, 64], sizes = [8, 32], strides = [1, 1]} : vector<8x96xf32> to vector<8x32xf32>
    %202 = arith.mulf %198, %201 : vector<8x32xf32>
    %203 = arith.addf %200, %202 : vector<8x32xf32>
    %204 = math.tanh %203 : vector<8x32xf32>
    %cst_39 = arith.constant 1.000000e+00 : f32
    %205 = vector.broadcast %cst_39 : f32 to vector<8x32xf32>
    %206 = arith.subf %205, %199 : vector<8x32xf32>
    %207 = arith.mulf %206, %204 : vector<8x32xf32>
    %208 = arith.mulf %199, %166 : vector<8x32xf32>
    %209 = arith.addf %207, %208 : vector<8x32xf32>
    %210 = arith.truncf %209 : vector<8x32xf32> to vector<8x32xbf16>
    %211 = vector.broadcast %6 : vector<1x32xf32> to vector<8x32xf32>
    %212 = arith.mulf %209, %211 : vector<8x32xf32>
    %cst_40 = arith.constant dense<0.000000e+00> : vector<8xf32>
    %213 = vector.multi_reduction <add>, %212, %cst_40 [1] : vector<8x32xf32> to vector<8xf32>
    %214 = vector.shape_cast %213 : vector<8xf32> to vector<8x1xf32>
    %215 = arith.addf %11, %214 : vector<8x1xf32>
    %216 = math.tanh %215 : vector<8x1xf32>
    %217 = math.exp %216 : vector<8x1xf32>
    %218 = arith.addf %15, %214 : vector<8x1xf32>
    %219 = math.tanh %218 : vector<8x1xf32>
    %220 = math.exp %219 : vector<8x1xf32>
    %221 = arith.addf %217, %220 : vector<8x1xf32>
    %cst_41 = arith.constant 9.99999997E-7 : f32
    %222 = vector.broadcast %cst_41 : f32 to vector<8x1xf32>
    %223 = arith.addf %221, %222 : vector<8x1xf32>
    %224 = tpu.reciprocal %223 {approx = true} : vector<8x1xf32> -> vector<8x1xf32>
    %225 = arith.mulf %217, %224 : vector<8x1xf32>
    %226 = vector.broadcast %225 : vector<8x1xf32> to vector<8x32xf32>
    %227 = arith.mulf %226, %3 : vector<8x32xf32>
    %228 = arith.mulf %220, %224 : vector<8x1xf32>
    %229 = vector.broadcast %228 : vector<8x1xf32> to vector<8x32xf32>
    %230 = arith.mulf %229, %4 : vector<8x32xf32>
    %231 = arith.addf %227, %230 : vector<8x32xf32>
    %232 = arith.truncf %231 : vector<8x32xf32> to vector<8x32xbf16>
    %233 = vector.extract_strided_slice %2 {offsets = [40, 0], sizes = [8, 96], strides = [1, 1]} : vector<64x96xf32> to vector<8x96xf32>
    %cst_42 = arith.constant dense<0.000000e+00> : vector<8x96xf32>
    %234 = tpu.matmul %210, %7, %cst_42 {dimension_numbers = #tpu.dot_dimension_numbers<[1], [0], [0], [1], [0, 0, 1, 1], [], []>} : vector<8x32xbf16>, vector<32x96xbf16>, vector<8x96xf32> -> vector<8x96xf32>
    %235 = arith.addf %233, %234 : vector<8x96xf32>
    %236 = arith.negf %235 : vector<8x96xf32>
    %237 = math.exp %236 : vector<8x96xf32>
    %cst_43 = arith.constant 1.000000e+00 : f32
    %238 = vector.broadcast %cst_43 : f32 to vector<8x96xf32>
    %239 = arith.addf %238, %237 : vector<8x96xf32>
    %240 = arith.divf %238, %239 : vector<8x96xf32>
    %241 = vector.extract_strided_slice %240 {offsets = [0, 0], sizes = [8, 32], strides = [1, 1]} : vector<8x96xf32> to vector<8x32xf32>
    %242 = vector.extract_strided_slice %240 {offsets = [0, 32], sizes = [8, 32], strides = [1, 1]} : vector<8x96xf32> to vector<8x32xf32>
    %243 = vector.extract_strided_slice %233 {offsets = [0, 64], sizes = [8, 32], strides = [1, 1]} : vector<8x96xf32> to vector<8x32xf32>
    %244 = vector.extract_strided_slice %234 {offsets = [0, 64], sizes = [8, 32], strides = [1, 1]} : vector<8x96xf32> to vector<8x32xf32>
    %245 = arith.mulf %241, %244 : vector<8x32xf32>
    %246 = arith.addf %243, %245 : vector<8x32xf32>
    %247 = math.tanh %246 : vector<8x32xf32>
    %cst_44 = arith.constant 1.000000e+00 : f32
    %248 = vector.broadcast %cst_44 : f32 to vector<8x32xf32>
    %249 = arith.subf %248, %242 : vector<8x32xf32>
    %250 = arith.mulf %249, %247 : vector<8x32xf32>
    %251 = arith.mulf %242, %209 : vector<8x32xf32>
    %252 = arith.addf %250, %251 : vector<8x32xf32>
    %253 = arith.truncf %252 : vector<8x32xf32> to vector<8x32xbf16>
    %254 = vector.broadcast %6 : vector<1x32xf32> to vector<8x32xf32>
    %255 = arith.mulf %252, %254 : vector<8x32xf32>
    %cst_45 = arith.constant dense<0.000000e+00> : vector<8xf32>
    %256 = vector.multi_reduction <add>, %255, %cst_45 [1] : vector<8x32xf32> to vector<8xf32>
    %257 = vector.shape_cast %256 : vector<8xf32> to vector<8x1xf32>
    %258 = arith.addf %11, %257 : vector<8x1xf32>
    %259 = math.tanh %258 : vector<8x1xf32>
    %260 = math.exp %259 : vector<8x1xf32>
    %261 = arith.addf %15, %257 : vector<8x1xf32>
    %262 = math.tanh %261 : vector<8x1xf32>
    %263 = math.exp %262 : vector<8x1xf32>
    %264 = arith.addf %260, %263 : vector<8x1xf32>
    %cst_46 = arith.constant 9.99999997E-7 : f32
    %265 = vector.broadcast %cst_46 : f32 to vector<8x1xf32>
    %266 = arith.addf %264, %265 : vector<8x1xf32>
    %267 = tpu.reciprocal %266 {approx = true} : vector<8x1xf32> -> vector<8x1xf32>
    %268 = arith.mulf %260, %267 : vector<8x1xf32>
    %269 = vector.broadcast %268 : vector<8x1xf32> to vector<8x32xf32>
    %270 = arith.mulf %269, %3 : vector<8x32xf32>
    %271 = arith.mulf %263, %267 : vector<8x1xf32>
    %272 = vector.broadcast %271 : vector<8x1xf32> to vector<8x32xf32>
    %273 = arith.mulf %272, %4 : vector<8x32xf32>
    %274 = arith.addf %270, %273 : vector<8x32xf32>
    %275 = arith.truncf %274 : vector<8x32xf32> to vector<8x32xbf16>
    %276 = vector.extract_strided_slice %2 {offsets = [48, 0], sizes = [8, 96], strides = [1, 1]} : vector<64x96xf32> to vector<8x96xf32>
    %cst_47 = arith.constant dense<0.000000e+00> : vector<8x96xf32>
    %277 = tpu.matmul %253, %7, %cst_47 {dimension_numbers = #tpu.dot_dimension_numbers<[1], [0], [0], [1], [0, 0, 1, 1], [], []>} : vector<8x32xbf16>, vector<32x96xbf16>, vector<8x96xf32> -> vector<8x96xf32>
    %278 = arith.addf %276, %277 : vector<8x96xf32>
    %279 = arith.negf %278 : vector<8x96xf32>
    %280 = math.exp %279 : vector<8x96xf32>
    %cst_48 = arith.constant 1.000000e+00 : f32
    %281 = vector.broadcast %cst_48 : f32 to vector<8x96xf32>
    %282 = arith.addf %281, %280 : vector<8x96xf32>
    %283 = arith.divf %281, %282 : vector<8x96xf32>
    %284 = vector.extract_strided_slice %283 {offsets = [0, 0], sizes = [8, 32], strides = [1, 1]} : vector<8x96xf32> to vector<8x32xf32>
    %285 = vector.extract_strided_slice %283 {offsets = [0, 32], sizes = [8, 32], strides = [1, 1]} : vector<8x96xf32> to vector<8x32xf32>
    %286 = vector.extract_strided_slice %276 {offsets = [0, 64], sizes = [8, 32], strides = [1, 1]} : vector<8x96xf32> to vector<8x32xf32>
    %287 = vector.extract_strided_slice %277 {offsets = [0, 64], sizes = [8, 32], strides = [1, 1]} : vector<8x96xf32> to vector<8x32xf32>
    %288 = arith.mulf %284, %287 : vector<8x32xf32>
    %289 = arith.addf %286, %288 : vector<8x32xf32>
    %290 = math.tanh %289 : vector<8x32xf32>
    %cst_49 = arith.constant 1.000000e+00 : f32
    %291 = vector.broadcast %cst_49 : f32 to vector<8x32xf32>
    %292 = arith.subf %291, %285 : vector<8x32xf32>
    %293 = arith.mulf %292, %290 : vector<8x32xf32>
    %294 = arith.mulf %285, %252 : vector<8x32xf32>
    %295 = arith.addf %293, %294 : vector<8x32xf32>
    %296 = arith.truncf %295 : vector<8x32xf32> to vector<8x32xbf16>
    %297 = vector.broadcast %6 : vector<1x32xf32> to vector<8x32xf32>
    %298 = arith.mulf %295, %297 : vector<8x32xf32>
    %cst_50 = arith.constant dense<0.000000e+00> : vector<8xf32>
    %299 = vector.multi_reduction <add>, %298, %cst_50 [1] : vector<8x32xf32> to vector<8xf32>
    %300 = vector.shape_cast %299 : vector<8xf32> to vector<8x1xf32>
    %301 = arith.addf %11, %300 : vector<8x1xf32>
    %302 = math.tanh %301 : vector<8x1xf32>
    %303 = math.exp %302 : vector<8x1xf32>
    %304 = arith.addf %15, %300 : vector<8x1xf32>
    %305 = math.tanh %304 : vector<8x1xf32>
    %306 = math.exp %305 : vector<8x1xf32>
    %307 = arith.addf %303, %306 : vector<8x1xf32>
    %cst_51 = arith.constant 9.99999997E-7 : f32
    %308 = vector.broadcast %cst_51 : f32 to vector<8x1xf32>
    %309 = arith.addf %307, %308 : vector<8x1xf32>
    %310 = tpu.reciprocal %309 {approx = true} : vector<8x1xf32> -> vector<8x1xf32>
    %311 = arith.mulf %303, %310 : vector<8x1xf32>
    %312 = vector.broadcast %311 : vector<8x1xf32> to vector<8x32xf32>
    %313 = arith.mulf %312, %3 : vector<8x32xf32>
    %314 = arith.mulf %306, %310 : vector<8x1xf32>
    %315 = vector.broadcast %314 : vector<8x1xf32> to vector<8x32xf32>
    %316 = arith.mulf %315, %4 : vector<8x32xf32>
    %317 = arith.addf %313, %316 : vector<8x32xf32>
    %318 = arith.truncf %317 : vector<8x32xf32> to vector<8x32xbf16>
    %319 = vector.extract_strided_slice %2 {offsets = [56, 0], sizes = [8, 96], strides = [1, 1]} : vector<64x96xf32> to vector<8x96xf32>
    %cst_52 = arith.constant dense<0.000000e+00> : vector<8x96xf32>
    %320 = tpu.matmul %296, %7, %cst_52 {dimension_numbers = #tpu.dot_dimension_numbers<[1], [0], [0], [1], [0, 0, 1, 1], [], []>} : vector<8x32xbf16>, vector<32x96xbf16>, vector<8x96xf32> -> vector<8x96xf32>
    %321 = arith.addf %319, %320 : vector<8x96xf32>
    %322 = arith.negf %321 : vector<8x96xf32>
    %323 = math.exp %322 : vector<8x96xf32>
    %cst_53 = arith.constant 1.000000e+00 : f32
    %324 = vector.broadcast %cst_53 : f32 to vector<8x96xf32>
    %325 = arith.addf %324, %323 : vector<8x96xf32>
    %326 = arith.divf %324, %325 : vector<8x96xf32>
    %327 = vector.extract_strided_slice %326 {offsets = [0, 0], sizes = [8, 32], strides = [1, 1]} : vector<8x96xf32> to vector<8x32xf32>
    %328 = vector.extract_strided_slice %326 {offsets = [0, 32], sizes = [8, 32], strides = [1, 1]} : vector<8x96xf32> to vector<8x32xf32>
    %329 = vector.extract_strided_slice %319 {offsets = [0, 64], sizes = [8, 32], strides = [1, 1]} : vector<8x96xf32> to vector<8x32xf32>
    %330 = vector.extract_strided_slice %320 {offsets = [0, 64], sizes = [8, 32], strides = [1, 1]} : vector<8x96xf32> to vector<8x32xf32>
    %331 = arith.mulf %327, %330 : vector<8x32xf32>
    %332 = arith.addf %329, %331 : vector<8x32xf32>
    %333 = math.tanh %332 : vector<8x32xf32>
    %cst_54 = arith.constant 1.000000e+00 : f32
    %334 = vector.broadcast %cst_54 : f32 to vector<8x32xf32>
    %335 = arith.subf %334, %328 : vector<8x32xf32>
    %336 = arith.mulf %335, %333 : vector<8x32xf32>
    %337 = arith.mulf %328, %295 : vector<8x32xf32>
    %338 = arith.addf %336, %337 : vector<8x32xf32>
    %339 = arith.truncf %338 : vector<8x32xf32> to vector<8x32xbf16>
    %340 = vector.broadcast %6 : vector<1x32xf32> to vector<8x32xf32>
    %341 = arith.mulf %338, %340 : vector<8x32xf32>
    %cst_55 = arith.constant dense<0.000000e+00> : vector<8xf32>
    %342 = vector.multi_reduction <add>, %341, %cst_55 [1] : vector<8x32xf32> to vector<8xf32>
    %343 = vector.shape_cast %342 : vector<8xf32> to vector<8x1xf32>
    %344 = arith.addf %11, %343 : vector<8x1xf32>
    %345 = math.tanh %344 : vector<8x1xf32>
    %346 = math.exp %345 : vector<8x1xf32>
    %347 = arith.addf %15, %343 : vector<8x1xf32>
    %348 = math.tanh %347 : vector<8x1xf32>
    %349 = math.exp %348 : vector<8x1xf32>
    %350 = arith.addf %346, %349 : vector<8x1xf32>
    %cst_56 = arith.constant 9.99999997E-7 : f32
    %351 = vector.broadcast %cst_56 : f32 to vector<8x1xf32>
    %352 = arith.addf %350, %351 : vector<8x1xf32>
    %353 = tpu.reciprocal %352 {approx = true} : vector<8x1xf32> -> vector<8x1xf32>
    %354 = arith.mulf %346, %353 : vector<8x1xf32>
    %355 = vector.broadcast %354 : vector<8x1xf32> to vector<8x32xf32>
    %356 = arith.mulf %355, %3 : vector<8x32xf32>
    %357 = arith.mulf %349, %353 : vector<8x1xf32>
    %358 = vector.broadcast %357 : vector<8x1xf32> to vector<8x32xf32>
    %359 = arith.mulf %358, %4 : vector<8x32xf32>
    %360 = arith.addf %356, %359 : vector<8x32xf32>
    %361 = arith.truncf %360 : vector<8x32xf32> to vector<8x32xbf16>
    %362 = tpu.concatenate %38, %81, %124, %167, %210, %253, %296, %339 in 0 : vector<8x32xbf16>, vector<8x32xbf16>, vector<8x32xbf16>, vector<8x32xbf16>, vector<8x32xbf16>, vector<8x32xbf16>, vector<8x32xbf16>, vector<8x32xbf16> -> vector<64x32xbf16>
    %363 = tpu.concatenate %60, %103, %146, %189, %232, %275, %318, %361 in 0 : vector<8x32xbf16>, vector<8x32xbf16>, vector<8x32xbf16>, vector<8x32xbf16>, vector<8x32xbf16>, vector<8x32xbf16>, vector<8x32xbf16>, vector<8x32xbf16> -> vector<64x32xbf16>
    %364 = tpu.concatenate %362, %363, %0 in 1 : vector<64x32xbf16>, vector<64x32xbf16>, vector<64x64xbf16> -> vector<64x128xbf16>
    %c0_57 = arith.constant 0 : index
    %c0_58 = arith.constant 0 : index
    %365 = vector.load %arg9[%c0_57, %c0_58] : memref<128x256xbf16, #tpu.memory_space<vmem>>, vector<128x256xbf16>
    %cst_59 = arith.constant dense<0.000000e+00> : vector<64x256xf32>
    %366 = tpu.matmul %364, %365, %cst_59 {dimension_numbers = #tpu.dot_dimension_numbers<[1], [0], [0], [1], [0, 0, 1, 1], [], []>} : vector<64x128xbf16>, vector<128x256xbf16>, vector<64x256xf32> -> vector<64x256xf32>
    %c0_60 = arith.constant 0 : index
    %c0_61 = arith.constant 0 : index
    %367 = vector.load %arg10[%c0_60, %c0_61] : memref<64x1xi32, #tpu.memory_space<vmem>>, vector<64x1xi32>
    %cst_62 = arith.constant dense<0xFF800000> : vector<64xf32>
    %368 = vector.multi_reduction <maximumf>, %366, %cst_62 [1] : vector<64x256xf32> to vector<64xf32>
    %369 = vector.shape_cast %368 : vector<64xf32> to vector<64x1xf32>
    %370 = vector.broadcast %369 : vector<64x1xf32> to vector<64x256xf32>
    %371 = arith.subf %366, %370 : vector<64x256xf32>
    %372 = math.exp %371 : vector<64x256xf32>
    %cst_63 = arith.constant dense<0.000000e+00> : vector<64xf32>
    %373 = vector.multi_reduction <add>, %372, %cst_63 [1] : vector<64x256xf32> to vector<64xf32>
    %374 = vector.shape_cast %373 : vector<64xf32> to vector<64x1xf32>
    %375 = math.log %374 : vector<64x1xf32>
    %376 = arith.addf %369, %375 : vector<64x1xf32>
    %377 = tpu.iota {dimensions = array<i32: 1>} : vector<64x256xi32>
    %378 = vector.broadcast %367 : vector<64x1xi32> to vector<64x256xi32>
    %379 = arith.cmpi eq, %377, %378 : vector<64x256xi32>
    %cst_64 = arith.constant 0.000000e+00 : f32
    %380 = vector.broadcast %cst_64 : f32 to vector<64x256xf32>
    %381 = arith.select %379, %366, %380 : vector<64x256xi1>, vector<64x256xf32>
    %cst_65 = arith.constant dense<0.000000e+00> : vector<64xf32>
    %382 = vector.multi_reduction <add>, %381, %cst_65 [1] : vector<64x256xf32> to vector<64xf32>
    %383 = vector.shape_cast %382 : vector<64xf32> to vector<64x1xf32>
    %c0_i32 = arith.constant 0 : i32
    %384 = vector.broadcast %c0_i32 : i32 to vector<64x1xi32>
    %385 = arith.cmpi ne, %367, %384 : vector<64x1xi32>
    %386 = arith.extui %385 : vector<64x1xi1> to vector<64x1xi32>
    %387 = arith.sitofp %386 : vector<64x1xi32> to vector<64x1xf32>
    %388 = arith.subf %376, %383 : vector<64x1xf32>
    %389 = arith.mulf %388, %387 : vector<64x1xf32>
    %c0_66 = arith.constant 0 : index
    %c0_67 = arith.constant 0 : index
    %390 = vector.load %arg11[%c0_66, %c0_67] : memref<64x1xf32, #tpu.memory_space<vmem>>, vector<64x1xf32>
    tpu.vector_store %arg11[%c0_66, %c0_67], %389 {strides = array<i32>} : memref<64x1xf32, #tpu.memory_space<vmem>>, vector<64x1xf32>,
    %cst_68 = arith.constant dense<0.000000e+00> : vector<1xf32>
    %391 = vector.multi_reduction <add>, %389, %cst_68 [0] : vector<64x1xf32> to vector<1xf32>
    %392 = vector.shape_cast %391 : vector<1xf32> to vector<1x1xf32>
    %cst_69 = arith.constant dense<0.000000e+00> : vector<1xf32>
    %393 = vector.multi_reduction <add>, %387, %cst_69 [0] : vector<64x1xf32> to vector<1xf32>
    %394 = vector.shape_cast %393 : vector<1xf32> to vector<1x1xf32>
    %cst_70 = arith.constant 1.000000e+00 : f32
    %395 = vector.broadcast %cst_70 : f32 to vector<1x1xf32>
    %396 = arith.maximumf %394, %395 : vector<1x1xf32>
    %397 = tpu.reciprocal %396 : vector<1x1xf32> -> vector<1x1xf32>
    %398 = arith.mulf %392, %397 : vector<1x1xf32>
    %c0_71 = arith.constant 0 : index
    %c0_72 = arith.constant 0 : index
    %399 = vector.load %arg12[%c0_71, %c0_72] : memref<1x1xf32, #tpu.memory_space<vmem>>, vector<1x1xf32>
    tpu.vector_store %arg12[%c0_71, %c0_72], %398 {strides = array<i32>} : memref<1x1xf32, #tpu.memory_space<vmem>>, vector<1x1xf32>,
    return
  }
  func.func @transform_0(%arg0: i32) -> (i32, i32) {
    %c0_i32 = arith.constant 0 : i32
    %c0_i32_0 = arith.constant 0 : i32
    %c0_i32_1 = arith.constant 0 : i32
    return %c0_i32, %c0_i32_0 : i32, i32
  }
  func.func @transform_1(%arg0: i32) -> (i32, i32) {
    %c0_i32 = arith.constant 0 : i32
    %c0_i32_0 = arith.constant 0 : i32
    %c0_i32_1 = arith.constant 0 : i32
    return %c0_i32, %c0_i32_0 : i32, i32
  }
  func.func @transform_2(%arg0: i32) -> (i32, i32) {
    %c0_i32 = arith.constant 0 : i32
    %c0_i32_0 = arith.constant 0 : i32
    %c0_i32_1 = arith.constant 0 : i32
    return %c0_i32, %c0_i32_0 : i32, i32
  }
  func.func @transform_3(%arg0: i32) -> (i32, i32) {
    %c0_i32 = arith.constant 0 : i32
    %c0_i32_0 = arith.constant 0 : i32
    %c0_i32_1 = arith.constant 0 : i32
    return %c0_i32, %c0_i32_0 : i32, i32
  }
  func.func @transform_4(%arg0: i32) -> (i32, i32) {
    %c0_i32 = arith.constant 0 : i32
    %c0_i32_0 = arith.constant 0 : i32
    %c0_i32_1 = arith.constant 0 : i32
    return %c0_i32, %c0_i32_0 : i32, i32
  }
  func.func @transform_5(%arg0: i32) -> (i32, i32) {
    %c0_i32 = arith.constant 0 : i32
    %c0_i32_0 = arith.constant 0 : i32
    %c0_i32_1 = arith.constant 0 : i32
    return %c0_i32, %c0_i32_0 : i32, i32
  }
  func.func @transform_6(%arg0: i32) -> (i32, i32) {
    %c0_i32 = arith.constant 0 : i32
    %c0_i32_0 = arith.constant 0 : i32
    %c0_i32_1 = arith.constant 0 : i32
    return %c0_i32, %c0_i32_0 : i32, i32
  }
  func.func @transform_7(%arg0: i32) -> (i32, i32) {
    %c0_i32 = arith.constant 0 : i32
    %c0_i32_0 = arith.constant 0 : i32
    %c0_i32_1 = arith.constant 0 : i32
    return %c0_i32, %c0_i32_0 : i32, i32
  }
  func.func @transform_8(%arg0: i32) -> (i32, i32) {
    %c0_i32 = arith.constant 0 : i32
    %c0_i32_0 = arith.constant 0 : i32
    %c0_i32_1 = arith.constant 0 : i32
    return %c0_i32, %c0_i32_0 : i32, i32
  }
  func.func @transform_9(%arg0: i32) -> (i32, i32) {
    %c0_i32 = arith.constant 0 : i32
    %c0_i32_0 = arith.constant 0 : i32
    %c0_i32_1 = arith.constant 0 : i32
    return %c0_i32, %c0_i32_0 : i32, i32
  }
  func.func @transform_10(%arg0: i32) -> (i32, i32) {
    %c0_i32 = arith.constant 0 : i32
    %c0_i32_0 = arith.constant 0 : i32
    %c0_i32_1 = arith.constant 0 : i32
    return %c0_i32, %c0_i32_0 : i32, i32
  }
  func.func @transform_11(%arg0: i32) -> (i32, i32) {
    %c0_i32 = arith.constant 0 : i32
    %c0_i32_0 = arith.constant 0 : i32
    %c0_i32_1 = arith.constant 0 : i32
    return %c0_i32, %c0_i32_0 : i32, i32
  }
}

</mosaic_0001>

<bundles_post_ra>
// kernel: expansion_net_forward.1
= control target key start
LH: loop header
LB: loop body
LE: loop exit
PB: predicated region body
PF: predicated region fallthrough
CT: control target
= control target key end

     0   :  { %s2595_s0 = inlined_call_operand.vmem [shape: bf16[64,64], index: 0, kind: input, shape index: {}]   ;;  %s2596_s1 = inlined_call_operand.vmem [shape: f32[8,32], index: 1, kind: input, shape index: {}]   ;;  %s2597_s2 = inlined_call_operand.vmem [shape: f32[8,32], index: 2, kind: input, shape index: {}]   ;;  %s2598_s3 = inlined_call_operand.vmem [shape: f32[8,32], index: 3, kind: input, shape index: {}]   ;;  %s2599_s4 = inlined_call_operand.vmem [shape: f32[1,32], index: 4, kind: input, shape index: {}]   ;;  %s2600_s5 = inlined_call_operand.vmem [shape: f32[1,32], index: 5, kind: input, shape index: {}]   ;;  %s2601_s6 = inlined_call_operand.vmem [shape: bf16[64,96], index: 6, kind: input, shape index: {}]   ;;  %s2602_s7 = inlined_call_operand.vmem [shape: bf16[32,96], index: 7, kind: input, shape index: {}]   ;;  %s2603_s8 = inlined_call_operand.vmem [shape: bf16[128,256], index: 8, kind: input, shape index: {}]   ;;  %s2604_s9 = inlined_call_operand.vmem [shape: s32[64,1], index: 9, kind: input, shape index: {}]   ;;  %s2605_s10 = inlined_call_operand.vmem [shape: f32[64,1], index: 10, kind: output, shape index: {0}]   ;;  %s2606_s11 = inlined_call_operand.hbm [shape: f32[1,1], index: 11, kind: output, shape index: {1}]  }
   0x1   :  { %v1596_v0 = vld [vmem:[%s2601_s6 + $0x18] sm:$0xff]  ;;  %v1910_v1 = vld [vmem:[%s2602_s7 + $0x8] sm:$0xff]  ;;  %v1595_v2 = vld [vmem:[%s2601_s6 + $0x10] sm:$0xff] }
   0x2   :  { %116 = vmatpush.bf16.msra.mxu0 %v1596_v0  ;;  %184 = vmatpush.bf16.msra.mxu1 %v1910_v1  ;;  %v1919_v3 = vld [vmem:[%s2602_s7] sm:$0xff] }
   0x3   :  { %v161_v4 = vld [vmem:[%s2596_s1] sm:$0xff]  ;;  %279 = vmatpush.bf16.msra.mxu2 %v1910_v1  ;;  %623 = vmatpush.bf16.msra.mxu3 %v1910_v1 }
   0x4   :  { %17 = vsyncpa [#allocation3], 0  ;;  %v162_v5 = vpack.c.bf16 %v161_v4, %v161_v4  ;;  %vm153_vm0 = vcmask 261120   ;;  %v1594_v6 = vld [vmem:[%s2601_s6 + $0x8] sm:$0xff]  ;;  %v1593_v7 = vld [vmem:[%s2601_s6] sm:$0xff]  ;;  %vm99_vm1 = vcmask 523264  }
   0x5   :  { %v1944_v8 = vld [vmem:[%s2595_s0] sm:$0xff]  ;;  %s1838_s6 = smov 64   ;;  %s1839_s12 = smov 96   ;;  %v1972_v63 = vld [vmem:[%s2595_s0 + $0x8] sm:$0xff]  ;;  %v1979_v0 = vld [vmem:[%s2595_s0 + $0x10] sm:$0xff] }
   0x6   :  { %117 = vmatpush.bf16.msra.mxu0 %v1595_v2  ;;  %185 = vmatpush.bf16.msra.mxu1 %v1919_v3  ;;  %s1840_s13 = smov 32   ;;  %s1446_s19 = sshll.u32 %s2606_s11, 4  ;;  %s1447_s19 = int_to_ptr.hbm [resolvable:$true] %s1446_s19 }
   0x7   :  { %280 = vmatpush.bf16.msra.mxu2 %v1919_v3  ;;  %624 = vmatpush.bf16.msra.mxu3 %v1919_v3 }
   0x9   :  { %1501 = vmatmul.msk.bf16.vlgmr.msra.gmra.mxu1 %vm153_vm0, %v162_v5 }
   0xa   :  { %451 = vmatpush.bf16.msrb.mxu1 %v1910_v1  ;;  %118 = vmatpush.bf16.msra.mxu0 %v1594_v6 }
   0xb   :  { %537 = vmatpush.bf16.msrb.mxu2 %v1910_v1 }
   0xe   :  { %452 = vmatpush.bf16.msrb.mxu1 %v1919_v3  ;;  %119 = vmatpush.bf16.msra.mxu0 %v1593_v7 }
   0xf   :  { %538 = vmatpush.bf16.msrb.mxu2 %v1919_v3 }
  0x11   :  { %1489 = vmatmul.msk.bf16.vlgmr.msra.gmra.mxu0 %vm99_vm1, %v1944_v8 }
  0x12   :  { %709 = vmatpush.bf16.msra.mxu1 %v1910_v1  ;;  %365 = vmatpush.bf16.msrb.mxu0 %v1910_v1 }
  0x16   :  { %710 = vmatpush.bf16.msra.mxu1 %v1919_v3  ;;  %366 = vmatpush.bf16.msrb.mxu0 %v1919_v3 }
  0x21   :  { %1490 = vmatmul.msk.bf16.gmra.mxu0 %vm99_vm1, %v1972_v63 }
  0x31   :  { %1491 = vmatmul.msk.bf16.gmra.mxu0 %vm99_vm1, %v1979_v0 }
  0x86   :  { %v187_v9 = vpop.f32.mrf.mxu1 }
  0x87   :  { %212 = vrot.lane.b32.xlu0 %v187_v9, %s1838_s6 }
  0x8e   :  { %v189_v10 = vpop.f32.mrf.mxu1  ;;  %v121_v11 = vpop.f32.mrf.mxu0 }
  0x8f   :  { %v191_v12 = vadd.f32 %v187_v9, %v121_v11  ;;  %v1993_v10 = vld [vmem:[%s2595_s0 + $0x18] sm:$0xff] }
  0x90   :  { %1492 = vmatmul.msk.bf16.gmra.mxu0 %vm99_vm1, %v1993_v10 }
  0x91   :  { %v1502_v13 = vmul.f32 -1.442695, %v191_v12 }
  0x93   :  { %1634 = vpow2.f32 %v1502_v13 }
  0x96   :  { %v123_v43 = vpop.f32.mrf.mxu0 }
  0x99   :  { %v1635_v14 = vpop.eup %1634 }
  0x9a   :  { %v195_v15 = vadd.f32 1.0, %v1635_v14 }
  0x9c   :  { %1636 = vrcp.f32 %v195_v15  ;;  %v207_v21 = vand.u32 2147483648, %v195_v15  ;;  %vm201_vm3 = vweird.f32 %v195_v15  ;;  %v205_v22 = vand.u32 2147483647, %v195_v15 }
  0x9e   :  { %v208_v24 = vor.u32 1.1754944e-38, %v207_v21  ;;  %vm206_vm5 = vcmp.eq.f32.partialorder %v205_v22, 8.507059e+37  ;;  %v126_v12 = vpop.f32.mrf.mxu0 }
  0xa2   :  { %v1637_v16 = vpop.eup %1636 }
  0xa3   :  { %v197_v17 = vmul.f32 %v1637_v16, %v195_v15  ;;  %vm202_vm2 = vweird.f32 %v1637_v16 }
  0xa4   :  { %vm203_vm4 = vmor %vm201_vm3, %vm202_vm2 }
  0xa5   :  { %v198_v18 = vsub.f32 1.0, %v197_v17 }
  0xa6   :  { %v2000_v13 = vpop.f32.mrf.mxu0 }
  0xa7   :  { %v199_v19 = vmul.f32 %v1637_v16, %v198_v18 }
  0xa9   :  { %v200_v20 = vadd.f32 %v1637_v16, %v199_v19 }
  0xab   :  { %v204_v23 = vsel %vm203_vm4, %v1637_v16, %v200_v20 }
  0xac   :  { %v209_v26 = vsel %vm206_vm5, %v208_v24, %v204_v23 }
  0xad   :  { %v222_v32 = vsub.f32 1.0, %v209_v26 }
  0xae   :  { %v2002_v14 = vpop.f32.mrf.mxu0 }
  0xb6   :  { %v2004_v15 = vpop.f32.mrf.mxu0 }
  0xf9   :  { %v213_v25 = vpop.permute.xlu0 %212 }
  0xfa   :  { %v215_v27 = vmul.f32 %v213_v25, %v209_v26 }
  0xfc   :  { %217 = vrot.lane.b32.xlu0 %v215_v27, %s1838_s6 }
 0x10d   :  { %v2006_v16 = vpop.f32.mrf.mxu0 }
 0x115   :  { %v2008_v17 = vpop.f32.mrf.mxu0 }
 0x16e   :  { %v218_v28 = vpop.permute.xlu0 %217 }
 0x16f   :  { %v220_v29 = vadd.f32 %v218_v28, %v121_v11 }
 0x171   :  { %1638 = vtanh.f32 %v220_v29 }
 0x177   :  { %v1639_v30 = vpop.eup %1638 }
 0x178   :  { %224 = vrot.lane.b32.xlu1 %v1639_v30, %s1839_s12 }
 0x180   :  { %229 = vrot.lane.b32.xlu1 %v161_v4, %s1840_s13 }
 0x1ea   :  { %v225_v31 = vpop.permute.xlu1 %224 }
 0x1eb   :  { %v227_v34 = vmul.f32 %v225_v31, %v222_v32 }
 0x1f2   :  { %v230_v33 = vpop.permute.xlu1 %229 }
 0x1f3   :  { %v232_v35 = vmul.f32 %v230_v33, %v209_v26 }
 0x1f5   :  { %v1955_v36 = vadd.f32 %v232_v35, %v227_v34 }
 0x1f7   :  { %v1959_v37 = vpack.c.bf16 %v1955_v36, %v1955_v36 }
 0x1f9   :  { %v266_v38 = vunpack.c.l.b16 %v1959_v37 }
 0x1fb   :  { %v267_v39 = vpack.c.b16 %v266_v38, %v266_v38 }
 0x1fd   :  { %268 = vrot.lane.b32.xlu2 %v267_v39, %s1839_s12 }
 0x257   :  { %v269_v40 = vpop.permute.xlu2 %268 }
 0x258   :  { %1503 = vmatmul.msk.bf16.vlgmr.msra.gmra.mxu2 %vm153_vm0, %v269_v40 }
 0x259   :  { %795 = vmatpush.bf16.msra.mxu2 %v1910_v1 }
 0x25d   :  { %796 = vmatpush.bf16.msra.mxu2 %v1919_v3 }
 0x2db   :  { %v282_v41 = vpop.f32.mrf.mxu2 }
 0x2dc   :  { %307 = vrot.lane.b32.xlu2 %v282_v41, %s1838_s6  ;;  %v286_v44 = vadd.f32 %v282_v41, %v123_v43 }
 0x2de   :  { %v1504_v45 = vmul.f32 -1.442695, %v286_v44 }
 0x2e0   :  { %1640 = vpow2.f32 %v1504_v45 }
 0x2e3   :  { %v284_v42 = vpop.f32.mrf.mxu2 }
 0x2e6   :  { %v1641_v46 = vpop.eup %1640 }
 0x2e7   :  { %v290_v47 = vadd.f32 1.0, %v1641_v46 }
 0x2e9   :  { %1642 = vrcp.f32 %v290_v47  ;;  %v302_v53 = vand.u32 2147483648, %v290_v47  ;;  %vm296_vm7 = vweird.f32 %v290_v47  ;;  %v300_v54 = vand.u32 2147483647, %v290_v47 }
 0x2eb   :  { %v303_v56 = vor.u32 1.1754944e-38, %v302_v53  ;;  %vm301_vm9 = vcmp.eq.f32.partialorder %v300_v54, 8.507059e+37 }
 0x2ef   :  { %v1643_v48 = vpop.eup %1642 }
 0x2f0   :  { %v292_v49 = vmul.f32 %v1643_v48, %v290_v47  ;;  %vm297_vm6 = vweird.f32 %v1643_v48 }
 0x2f1   :  { %vm298_vm8 = vmor %vm296_vm7, %vm297_vm6 }
 0x2f2   :  { %v293_v50 = vsub.f32 1.0, %v292_v49 }
 0x2f4   :  { %v294_v51 = vmul.f32 %v1643_v48, %v293_v50 }
 0x2f6   :  { %v295_v52 = vadd.f32 %v1643_v48, %v294_v51 }
 0x2f8   :  { %v299_v55 = vsel %vm298_vm8, %v1643_v48, %v295_v52 }
 0x2f9   :  { %v304_v58 = vsel %vm301_vm9, %v303_v56, %v299_v55 }
 0x2fa   :  { %v317_v1 = vsub.f32 1.0, %v304_v58  ;;  %v323_v3 = vmul.f32 %v304_v58, %v1955_v36 }
 0x336   :  { %v308_v57 = vpop.permute.xlu2 %307 }
 0x337   :  { %v310_v59 = vmul.f32 %v308_v57, %v304_v58 }
 0x339   :  { %312 = vrot.lane.b32.xlu0 %v310_v59, %s1838_s6 }
 0x3ab   :  { %v313_v60 = vpop.permute.xlu0 %312 }
 0x3ac   :  { %v315_v61 = vadd.f32 %v313_v60, %v123_v43 }
 0x3ae   :  { %1644 = vtanh.f32 %v315_v61 }
 0x3b4   :  { %v1645_v62 = vpop.eup %1644 }
 0x3b5   :  { %319 = vrot.lane.b32.xlu1 %v1645_v62, %s1839_s12 }
 0x427   :  { %v320_v2 = vpop.permute.xlu1 %319 }
 0x428   :  { %v322_v4 = vmul.f32 %v320_v2, %v317_v1 }
 0x42a   :  { %v1984_v5 = vadd.f32 %v323_v3, %v322_v4 }
 0x42c   :  { %v325_v6 = vpack.c.bf16 %v1984_v5, %v1984_v5 }
 0x42e   :  { %v352_v7 = vunpack.c.l.b16 %v325_v6 }
 0x430   :  { %v1988_v9 = vpack.c.b16 %v352_v7, %v352_v7 }
 0x432   :  { %354 = vrot.lane.b32.xlu2 %v1988_v9, %s1839_s12 }
 0x48c   :  { %v355_v11 = vpop.permute.xlu2 %354 }
 0x48d   :  { %1505 = vmatmul.msk.bf16.vlgmr.msrb.gmra.mxu0 %vm153_vm0, %v355_v11 }
 0x50a   :  { %v368_v18 = vpop.f32.mrf.mxu0 }
 0x50b   :  { %393 = vrot.lane.b32.xlu0 %v368_v18, %s1838_s6  ;;  %v372_v20 = vadd.f32 %v368_v18, %v126_v12 }
 0x50d   :  { %v1506_v21 = vmul.f32 -1.442695, %v372_v20 }
 0x50f   :  { %1646 = vpow2.f32 %v1506_v21 }
 0x512   :  { %v370_v19 = vpop.f32.mrf.mxu0 }
 0x515   :  { %v1647_v22 = vpop.eup %1646 }
 0x516   :  { %v376_v23 = vadd.f32 1.0, %v1647_v22 }
 0x518   :  { %1648 = vrcp.f32 %v376_v23  ;;  %v388_v29 = vand.u32 2147483648, %v376_v23  ;;  %vm382_vm11 = vweird.f32 %v376_v23  ;;  %v386_v30 = vand.u32 2147483647, %v376_v23 }
 0x51a   :  { %v389_v32 = vor.u32 1.1754944e-38, %v388_v29  ;;  %vm387_vm13 = vcmp.eq.f32.partialorder %v386_v30, 8.507059e+37 }
 0x51e   :  { %v1649_v24 = vpop.eup %1648 }
 0x51f   :  { %v378_v25 = vmul.f32 %v1649_v24, %v376_v23  ;;  %vm383_vm10 = vweird.f32 %v1649_v24 }
 0x520   :  { %vm384_vm12 = vmor %vm382_vm11, %vm383_vm10 }
 0x521   :  { %v379_v26 = vsub.f32 1.0, %v378_v25 }
 0x523   :  { %v380_v27 = vmul.f32 %v1649_v24, %v379_v26 }
 0x525   :  { %v381_v28 = vadd.f32 %v1649_v24, %v380_v27 }
 0x527   :  { %v385_v31 = vsel %vm384_vm12, %v1649_v24, %v381_v28 }
 0x528   :  { %v390_v34 = vsel %vm387_vm13, %v389_v32, %v385_v31 }
 0x529   :  { %v403_v41 = vsub.f32 1.0, %v390_v34  ;;  %v409_v43 = vmul.f32 %v390_v34, %v1984_v5 }
 0x57d   :  { %v394_v33 = vpop.permute.xlu0 %393 }
 0x57e   :  { %v396_v35 = vmul.f32 %v394_v33, %v390_v34 }
 0x580   :  { %398 = vrot.lane.b32.xlu1 %v396_v35, %s1838_s6 }
 0x5f2   :  { %v399_v38 = vpop.permute.xlu1 %398 }
 0x5f3   :  { %v401_v39 = vadd.f32 %v399_v38, %v126_v12 }
 0x5f5   :  { %1650 = vtanh.f32 %v401_v39 }
 0x5fb   :  { %v1651_v40 = vpop.eup %1650 }
 0x5fc   :  { %405 = vrot.lane.b32.xlu2 %v1651_v40, %s1839_s12 }
 0x656   :  { %v406_v42 = vpop.permute.xlu2 %405 }
 0x657   :  { %v408_v44 = vmul.f32 %v406_v42, %v403_v41 }
 0x659   :  { %v2014_v45 = vadd.f32 %v409_v43, %v408_v44 }
 0x65b   :  { %v2018_v46 = vpack.c.bf16 %v2014_v45, %v2014_v45 }
 0x65d   :  { %v438_v47 = vunpack.c.l.b16 %v2018_v46 }
 0x65f   :  { %v439_v48 = vpack.c.b16 %v438_v47, %v438_v47 }
 0x661   :  { %440 = vrot.lane.b32.xlu0 %v439_v48, %s1839_s12 }
 0x6d3   :  { %v441_v49 = vpop.permute.xlu0 %440 }
 0x6d4   :  { %1507 = vmatmul.msk.bf16.vlgmr.msrb.gmra.mxu1 %vm153_vm0, %v441_v49 }
 0x751   :  { %v454_v50 = vpop.f32.mrf.mxu1 }
 0x752   :  { %479 = vrot.lane.b32.xlu1 %v454_v50, %s1838_s6  ;;  %v458_v52 = vadd.f32 %v454_v50, %v2000_v13 }
 0x754   :  { %v1508_v53 = vmul.f32 -1.442695, %v458_v52 }
 0x756   :  { %1652 = vpow2.f32 %v1508_v53 }
 0x759   :  { %v456_v51 = vpop.f32.mrf.mxu1 }
 0x75c   :  { %v1653_v54 = vpop.eup %1652 }
 0x75d   :  { %v462_v55 = vadd.f32 1.0, %v1653_v54 }
 0x75f   :  { %1654 = vrcp.f32 %v462_v55  ;;  %v474_v61 = vand.u32 2147483648, %v462_v55  ;;  %vm468_vm15 = vweird.f32 %v462_v55  ;;  %v472_v62 = vand.u32 2147483647, %v462_v55 }
 0x761   :  { %v475_v2 = vor.u32 1.1754944e-38, %v474_v61  ;;  %vm473_vm3 = vcmp.eq.f32.partialorder %v472_v62, 8.507059e+37 }
 0x765   :  { %v1655_v56 = vpop.eup %1654 }
 0x766   :  { %v464_v57 = vmul.f32 %v1655_v56, %v462_v55  ;;  %vm469_vm14 = vweird.f32 %v1655_v56 }
 0x767   :  { %vm470_vm2 = vmor %vm468_vm15, %vm469_vm14 }
 0x768   :  { %v465_v58 = vsub.f32 1.0, %v464_v57 }
 0x76a   :  { %v466_v59 = vmul.f32 %v1655_v56, %v465_v58 }
 0x76c   :  { %v467_v60 = vadd.f32 %v1655_v56, %v466_v59 }
 0x76e   :  { %v471_v1 = vsel %vm470_vm2, %v1655_v56, %v467_v60 }
 0x76f   :  { %v476_v4 = vsel %vm473_vm3, %v475_v2, %v471_v1 }
 0x770   :  { %v489_v18 = vsub.f32 1.0, %v476_v4  ;;  %v495_v20 = vmul.f32 %v476_v4, %v2014_v45 }
 0x7c4   :  { %v480_v3 = vpop.permute.xlu1 %479 }
 0x7c5   :  { %v482_v6 = vmul.f32 %v480_v3, %v476_v4 }
 0x7c7   :  { %484 = vrot.lane.b32.xlu2 %v482_v6, %s1838_s6 }
 0x821   :  { %v485_v7 = vpop.permute.xlu2 %484 }
 0x822   :  { %v487_v11 = vadd.f32 %v485_v7, %v2000_v13 }
 0x824   :  { %1656 = vtanh.f32 %v487_v11 }
 0x82a   :  { %v1657_v12 = vpop.eup %1656 }
 0x82b   :  { %491 = vrot.lane.b32.xlu0 %v1657_v12, %s1839_s12 }
 0x89d   :  { %v492_v19 = vpop.permute.xlu0 %491 }
 0x89e   :  { %v494_v21 = vmul.f32 %v492_v19, %v489_v18 }
 0x8a0   :  { %v2029_v22 = vadd.f32 %v495_v20, %v494_v21 }
 0x8a2   :  { %v497_v23 = vpack.c.bf16 %v2029_v22, %v2029_v22 }
 0x8a4   :  { %v524_v24 = vunpack.c.l.b16 %v497_v23 }
 0x8a6   :  { %v2033_v25 = vpack.c.b16 %v524_v24, %v524_v24 }
 0x8a8   :  { %526 = vrot.lane.b32.xlu1 %v2033_v25, %s1839_s12 }
 0x91a   :  { %v527_v13 = vpop.permute.xlu1 %526 }
 0x91b   :  { %1509 = vmatmul.msk.bf16.vlgmr.msrb.gmra.mxu2 %vm153_vm0, %v527_v13 }
 0x99e   :  { %v540_v26 = vpop.f32.mrf.mxu2 }
 0x99f   :  { %565 = vrot.lane.b32.xlu2 %v540_v26, %s1838_s6  ;;  %v544_v28 = vadd.f32 %v540_v26, %v2002_v14 }
 0x9a1   :  { %v1510_v29 = vmul.f32 -1.442695, %v544_v28 }
 0x9a3   :  { %1658 = vpow2.f32 %v1510_v29 }
 0x9a6   :  { %v542_v27 = vpop.f32.mrf.mxu2 }
 0x9a9   :  { %v1659_v30 = vpop.eup %1658 }
 0x9aa   :  { %v548_v31 = vadd.f32 1.0, %v1659_v30 }
 0x9ac   :  { %1660 = vrcp.f32 %v548_v31  ;;  %v560_v39 = vand.u32 2147483648, %v548_v31  ;;  %vm554_vm5 = vweird.f32 %v548_v31  ;;  %v558_v40 = vand.u32 2147483647, %v548_v31 }
 0x9ae   :  { %v561_v42 = vor.u32 1.1754944e-38, %v560_v39  ;;  %vm559_vm7 = vcmp.eq.f32.partialorder %v558_v40, 8.507059e+37 }
 0x9b2   :  { %v1661_v32 = vpop.eup %1660 }
 0x9b3   :  { %v550_v33 = vmul.f32 %v1661_v32, %v548_v31  ;;  %vm555_vm4 = vweird.f32 %v1661_v32 }
 0x9b4   :  { %vm556_vm6 = vmor %vm554_vm5, %vm555_vm4 }
 0x9b5   :  { %v551_v34 = vsub.f32 1.0, %v550_v33 }
 0x9b7   :  { %v552_v35 = vmul.f32 %v1661_v32, %v551_v34 }
 0x9b9   :  { %v553_v38 = vadd.f32 %v1661_v32, %v552_v35 }
 0x9bb   :  { %v557_v41 = vsel %vm556_vm6, %v1661_v32, %v553_v38  ;;  %vm870_vm6 = vcmask 1043456  }
 0x9bc   :  { %v562_v44 = vsel %vm559_vm7, %v561_v42, %v557_v41 }
 0x9bd   :  { %v575_v51 = vsub.f32 1.0, %v562_v44  ;;  %v581_v53 = vmul.f32 %v562_v44, %v2029_v22 }
 0x9f9   :  { %v566_v43 = vpop.permute.xlu2 %565 }
 0x9fa   :  { %v568_v47 = vmul.f32 %v566_v43, %v562_v44 }
 0x9fc   :  { %570 = vrot.lane.b32.xlu0 %v568_v47, %s1838_s6 }
 0xa6e   :  { %v571_v48 = vpop.permute.xlu0 %570 }
 0xa6f   :  { %v573_v49 = vadd.f32 %v571_v48, %v2002_v14 }
 0xa71   :  { %1662 = vtanh.f32 %v573_v49 }
 0xa77   :  { %v1663_v50 = vpop.eup %1662 }
 0xa78   :  { %577 = vrot.lane.b32.xlu1 %v1663_v50, %s1839_s12 }
 0xaea   :  { %v578_v52 = vpop.permute.xlu1 %577 }
 0xaeb   :  { %v580_v54 = vmul.f32 %v578_v52, %v575_v51 }
 0xaed   :  { %v2044_v55 = vadd.f32 %v581_v53, %v580_v54 }
 0xaef   :  { %v2048_v56 = vpack.c.bf16 %v2044_v55, %v2044_v55 }
 0xaf1   :  { %v610_v57 = vunpack.c.l.b16 %v2048_v56 }
 0xaf3   :  { %v611_v58 = vpack.c.b16 %v610_v57, %v610_v57 }
 0xaf5   :  { %612 = vrot.lane.b32.xlu2 %v611_v58, %s1839_s12 }
 0xb4f   :  { %v613_v14 = vpop.permute.xlu2 %612 }
 0xb50   :  { %1511 = vmatmul.msk.bf16.vlgmr.msra.gmra.mxu3 %vm153_vm0, %v613_v14 }
 0xbd3   :  { %v626_v59 = vpop.f32.mrf.mxu3 }
 0xbd4   :  { %651 = vrot.lane.b32.xlu0 %v626_v59, %s1838_s6  ;;  %v630_v61 = vadd.f32 %v626_v59, %v2004_v15 }
 0xbd6   :  { %v1512_v62 = vmul.f32 -1.442695, %v630_v61 }
 0xbd8   :  { %1664 = vpow2.f32 %v1512_v62 }
 0xbdb   :  { %v628_v60 = vpop.f32.mrf.mxu3 }
 0xbde   :  { %v1665_v1 = vpop.eup %1664 }
 0xbdf   :  { %v634_v2 = vadd.f32 1.0, %v1665_v1 }
 0xbe1   :  { %1666 = vrcp.f32 %v634_v2  ;;  %v646_v12 = vand.u32 2147483648, %v634_v2  ;;  %vm640_vm9 = vweird.f32 %v634_v2  ;;  %v644_v18 = vand.u32 2147483647, %v634_v2 }
 0xbe3   :  { %v647_v20 = vor.u32 1.1754944e-38, %v646_v12  ;;  %vm645_vm11 = vcmp.eq.f32.partialorder %v644_v18, 8.507059e+37 }
 0xbe7   :  { %v1667_v3 = vpop.eup %1666 }
 0xbe8   :  { %v636_v4 = vmul.f32 %v1667_v3, %v634_v2  ;;  %vm641_vm8 = vweird.f32 %v1667_v3 }
 0xbe9   :  { %vm642_vm10 = vmor %vm640_vm9, %vm641_vm8 }
 0xbea   :  { %v637_v6 = vsub.f32 1.0, %v636_v4 }
 0xbec   :  { %v638_v7 = vmul.f32 %v1667_v3, %v637_v6 }
 0xbee   :  { %v639_v11 = vadd.f32 %v1667_v3, %v638_v7 }
 0xbf0   :  { %v643_v19 = vsel %vm642_vm10, %v1667_v3, %v639_v11 }
 0xbf1   :  { %v648_v23 = vsel %vm645_vm11, %v647_v20, %v643_v19 }
 0xbf2   :  { %v661_v28 = vsub.f32 1.0, %v648_v23  ;;  %v667_v30 = vmul.f32 %v648_v23, %v2044_v55 }
 0xc46   :  { %v652_v21 = vpop.permute.xlu0 %651 }
 0xc47   :  { %v654_v24 = vmul.f32 %v652_v21, %v648_v23  ;;  %v2092_v21 = vld [vmem:[%s2599_s4] ss:$0 sm:$0xff] }
 0xc48   :  { %v2097_v23 = vld [vmem:[%s2598_s3] sm:$0xff] }
 0xc49   :  { %656 = vrot.lane.b32.xlu1 %v654_v24, %s1838_s6  ;;  %v157_v24 = vmul.f32 %v2092_v21, %v2097_v23 }
 0xcbb   :  { %v657_v13 = vpop.permute.xlu1 %656 }
 0xcbc   :  { %v659_v26 = vadd.f32 %v657_v13, %v2004_v15 }
 0xcbe   :  { %1668 = vtanh.f32 %v659_v26 }
 0xcc4   :  { %v1669_v27 = vpop.eup %1668 }
 0xcc5   :  { %663 = vrot.lane.b32.xlu2 %v1669_v27, %s1839_s12 }
 0xd1f   :  { %v664_v29 = vpop.permute.xlu2 %663 }
 0xd20   :  { %v666_v31 = vmul.f32 %v664_v29, %v661_v28 }
 0xd22   :  { %v668_v32 = vadd.f32 %v667_v30, %v666_v31 }
 0xd24   :  { %v669_v33 = vpack.c.bf16 %v668_v32, %v668_v32 }
 0xd26   :  { %v696_v34 = vunpack.c.l.b16 %v669_v33 }
 0xd28   :  { %v2059_v35 = vpack.c.b16 %v696_v34, %v696_v34 }
 0xd2a   :  { %698 = vrot.lane.b32.xlu0 %v2059_v35, %s1839_s12 }
 0xd9c   :  { %v699_v38 = vpop.permute.xlu0 %698 }
 0xd9d   :  { %1513 = vmatmul.msk.bf16.vlgmr.msra.gmra.mxu1 %vm153_vm0, %v699_v38 }
 0xe1a   :  { %v712_v15 = vpop.f32.mrf.mxu1 }
 0xe1b   :  { %737 = vrot.lane.b32.xlu1 %v712_v15, %s1838_s6  ;;  %v716_v40 = vadd.f32 %v712_v15, %v2006_v16 }
 0xe1d   :  { %v1514_v41 = vmul.f32 -1.442695, %v716_v40 }
 0xe1f   :  { %1670 = vpow2.f32 %v1514_v41 }
 0xe22   :  { %v714_v39 = vpop.f32.mrf.mxu1 }
 0xe25   :  { %v1671_v42 = vpop.eup %1670 }
 0xe26   :  { %v720_v43 = vadd.f32 1.0, %v1671_v42 }
 0xe28   :  { %1672 = vrcp.f32 %v720_v43  ;;  %v732_v51 = vand.u32 2147483648, %v720_v43  ;;  %vm726_vm13 = vweird.f32 %v720_v43  ;;  %v730_v52 = vand.u32 2147483647, %v720_v43 }
 0xe2a   :  { %v733_v54 = vor.u32 1.1754944e-38, %v732_v51  ;;  %vm731_vm15 = vcmp.eq.f32.partialorder %v730_v52, 8.507059e+37 }
 0xe2e   :  { %v1673_v44 = vpop.eup %1672 }
 0xe2f   :  { %v722_v47 = vmul.f32 %v1673_v44, %v720_v43  ;;  %vm727_vm12 = vweird.f32 %v1673_v44 }
 0xe30   :  { %vm728_vm14 = vmor %vm726_vm13, %vm727_vm12 }
 0xe31   :  { %v723_v48 = vsub.f32 1.0, %v722_v47 }
 0xe33   :  { %v724_v49 = vmul.f32 %v1673_v44, %v723_v48 }
 0xe35   :  { %v725_v50 = vadd.f32 %v1673_v44, %v724_v49 }
 0xe37   :  { %v729_v53 = vsel %vm728_vm14, %v1673_v44, %v725_v50 }
 0xe38   :  { %v734_v58 = vsel %vm731_vm15, %v733_v54, %v729_v53 }
 0xe39   :  { %v747_v62 = vsub.f32 1.0, %v734_v58  ;;  %v753_v2 = vmul.f32 %v734_v58, %v668_v32 }
 0xe8d   :  { %v738_v57 = vpop.permute.xlu1 %737 }
 0xe8e   :  { %v740_v14 = vmul.f32 %v738_v57, %v734_v58 }
 0xe90   :  { %742 = vrot.lane.b32.xlu2 %v740_v14, %s1838_s6 }
 0xeea   :  { %v743_v59 = vpop.permute.xlu2 %742 }
 0xeeb   :  { %v745_v60 = vadd.f32 %v743_v59, %v2006_v16  ;;  %v1632_v16 = vld [vmem:[%s2600_s5] ss:$0 sm:$0xff] }
 0xeed   :  { %1674 = vtanh.f32 %v745_v60 }
 0xef3   :  { %v1675_v61 = vpop.eup %1674 }
 0xef4   :  { %749 = vrot.lane.b32.xlu0 %v1675_v61, %s1839_s12 }
 0xf66   :  { %v750_v1 = vpop.permute.xlu0 %749 }
 0xf67   :  { %v752_v3 = vmul.f32 %v750_v1, %v747_v62 }
 0xf69   :  { %v2069_v4 = vadd.f32 %v753_v2, %v752_v3 }
 0xf6b   :  { %v2073_v6 = vpack.c.bf16 %v2069_v4, %v2069_v4 }
 0xf6d   :  { %v782_v7 = vunpack.c.l.b16 %v2073_v6 }
 0xf6f   :  { %v783_v11 = vpack.c.b16 %v782_v7, %v782_v7 }
 0xf71   :  { %784 = vrot.lane.b32.xlu1 %v783_v11, %s1839_s12  ;;  %v873_v11 = vsel %vm870_vm6, %v1959_v37, %v1988_v9 }
 0xf79   :  { %237 = vrot.lane.b32.xlu1 %v1632_v16, %s1840_s13 }
 0xfe3   :  { %v785_v12 = vpop.permute.xlu1 %784 }
 0xfe4   :  { %1515 = vmatmul.msk.bf16.vlgmr.msra.gmra.mxu2 %vm153_vm0, %v785_v12 }
 0xfeb   :  { %v2082_v18 = vpop.permute.xlu1 %237 }
 0xfec   :  { %v240_v19 = vmul.f32 %v2082_v18, %v1955_v36  ;;  %v670_v20 = vmul.f32 %v668_v32, %v2082_v18  ;;  %v158_v36 = vsel %vm153_vm0, %v157_v24, 0.0  ;;  %v756_v13 = vmul.f32 %v2069_v4, %v2082_v18 }
 0xfed   :  { %v326_v27 = vmul.f32 %v1984_v5, %v2082_v18  ;;  %v498_v29 = vmul.f32 %v2029_v22, %v2082_v18  ;;  %v584_v30 = vmul.f32 %v2044_v55, %v2082_v18  ;;  %v412_v50 = vmul.f32 %v2014_v45, %v2082_v18 }
 0xfee   :  { %242 = vrot.lane.b32.xlu1 %v240_v19, %s1839_s12 }
 0xff6   :  { %672 = vrot.lane.b32.xlu1 %v670_v20, %s1839_s12 }
0x1020   :  { %159 = vadd.xlane.f32.xlu1 %v158_v36 }
0x1039   :  { %758 = vrot.lane.b32.xlu1 %v756_v13, %s1839_s12 }
0x1060   :  { %v243_v51 = vpop.permute.xlu1 %242 }
0x1061   :  { %v245_v52 = vsel %vm153_vm0, %v243_v51, 0.0 }
0x1067   :  { %v798_v26 = vpop.f32.mrf.mxu2 }
0x1068   :  { %823 = vrot.lane.b32.xlu2 %v798_v26, %s1838_s6  ;;  %v802_v31 = vadd.f32 %v798_v26, %v2008_v17  ;;  %v673_v14 = vpop.permute.xlu1 %672 }
0x106a   :  { %v1516_v32 = vmul.f32 -1.442695, %v802_v31 }
0x106c   :  { %1676 = vpow2.f32 %v1516_v32 }
0x106f   :  { %v800_v28 = vpop.f32.mrf.mxu2 }
0x1070   :  { %328 = vrot.lane.b32.xlu2 %v326_v27, %s1839_s12 }
0x1072   :  { %v1677_v33 = vpop.eup %1676 }
0x1073   :  { %v806_v34 = vadd.f32 1.0, %v1677_v33 }
0x1075   :  { %1678 = vrcp.f32 %v806_v34  ;;  %v818_v22 = vand.u32 2147483648, %v806_v34  ;;  %vm812_vm3 = vweird.f32 %v806_v34  ;;  %v816_v41 = vand.u32 2147483647, %v806_v34 }
0x1077   :  { %v819_v42 = vor.u32 1.1754944e-38, %v818_v22  ;;  %vm817_vm5 = vcmp.eq.f32.partialorder %v816_v41, 8.507059e+37 }
0x1078   :  { %500 = vrot.lane.b32.xlu2 %v498_v29, %s1839_s12 }
0x107b   :  { %v1679_v5 = vpop.eup %1678 }
0x107c   :  { %v808_v38 = vmul.f32 %v1679_v5, %v806_v34  ;;  %vm813_vm2 = vweird.f32 %v1679_v5 }
0x107d   :  { %vm814_vm4 = vmor %vm812_vm3, %vm813_vm2 }
0x107e   :  { %v809_v15 = vsub.f32 1.0, %v808_v38 }
0x1080   :  { %586 = vrot.lane.b32.xlu2 %v584_v30, %s1839_s12  ;;  %v810_v39 = vmul.f32 %v1679_v5, %v809_v15 }
0x1082   :  { %v811_v40 = vadd.f32 %v1679_v5, %v810_v39 }
0x1084   :  { %v815_v55 = vsel %vm814_vm4, %v1679_v5, %v811_v40  ;;  %v675_v40 = vsel %vm153_vm0, %v673_v14, 0.0 }
0x1085   :  { %v820_v44 = vsel %vm817_vm5, %v819_v42, %v815_v55 }
0x1086   :  { %v833_v12 = vsub.f32 1.0, %v820_v44  ;;  %v839_v20 = vmul.f32 %v820_v44, %v2069_v4 }
0x1093   :  { %v2126_v61 = vpop.xlane.xlu1 %159 }
0x10ab   :  { %v759_v2 = vpop.permute.xlu1 %758 }
0x10ac   :  { %v761_v3 = vsel %vm153_vm0, %v759_v2, 0.0 }
0x10c2   :  { %v824_v43 = vpop.permute.xlu2 %823 }
0x10c3   :  { %v826_v47 = vmul.f32 %v824_v43, %v820_v44 }
0x10c5   :  { %828 = vrot.lane.b32.xlu0 %v826_v47, %s1838_s6 }
0x10ca   :  { %v329_v48 = vpop.permute.xlu2 %328 }
0x10cb   :  { %v331_v49 = vsel %vm153_vm0, %v329_v48, 0.0 }
0x10cc   :  { %332 = vadd.xlane.f32.xlu2 %v331_v49 }
0x10cd   :  { %414 = vrot.lane.b32.xlu0 %v412_v50, %s1839_s12 }
0x10d2   :  { %v501_v53 = vpop.permute.xlu2 %500 }
0x10d3   :  { %v503_v54 = vsel %vm153_vm0, %v501_v53, 0.0 }
0x10d4   :  { %246 = vadd.xlane.f32.xlu2 %v245_v52 }
0x10da   :  { %v587_v62 = vpop.permute.xlu2 %586 }
0x10db   :  { %v589_v1 = vsel %vm153_vm0, %v587_v62, 0.0 }
0x10dc   :  { %504 = vadd.xlane.f32.xlu2 %v503_v54 }
0x1137   :  { %v829_v57 = vpop.permute.xlu0 %828 }
0x1138   :  { %v831_v58 = vadd.f32 %v829_v57, %v2008_v17  ;;  %v2133_v17 = vld [vmem:[%s2597_s2] sm:$0xff] }
0x1139   :  { %v152_v7 = vmul.f32 %v2092_v21, %v2133_v17 }
0x113a   :  { %1680 = vtanh.f32 %v831_v58 }
0x113b   :  { %v154_v16 = vsel %vm153_vm0, %v152_v7, 0.0 }
0x113f   :  { %v415_v59 = vpop.permute.xlu0 %414  ;;  %v333_v13 = vpop.xlane.xlu2 %332 }
0x1140   :  { %v1681_v60 = vpop.eup %1680  ;;  %v417_v45 = vsel %vm153_vm0, %v415_v59, 0.0  ;;  %v338_v26 = vadd.f32 %v333_v13, %v2126_v61 }
0x1141   :  { %835 = vrot.lane.b32.xlu0 %v1681_v60, %s1839_s12  ;;  %418 = vadd.xlane.f32.xlu2 %v417_v45 }
0x1142   :  { %1682 = vtanh.f32 %v338_v26 }
0x1147   :  { %v247_v37 = vpop.xlane.xlu2 %246 }
0x1149   :  { %590 = vadd.xlane.f32.xlu2 %v589_v1 }
0x114f   :  { %v505_v9 = vpop.xlane.xlu2 %504 }
0x1150   :  { %v510_v28 = vadd.f32 %v505_v9, %v2126_v61 }
0x1151   :  { %762 = vadd.xlane.f32.xlu2 %v761_v3 }
0x1169   :  { %911 = vrot.lane.b32.xlu2 %v873_v11, %s1839_s12 }
0x116b   :  { %155 = vadd.xlane.f32.xlu0 %v154_v16 }
0x1171   :  { %931 = vrot.lane.b32.xlu2 %v1944_v8, %s1838_s6  ;;  %v252_v8 = vadd.f32 %v247_v37, %v2126_v61 }
0x1173   :  { %1684 = vtanh.f32 %v252_v8 }
0x1174   :  { %1686 = vtanh.f32 %v510_v28 }
0x11b3   :  { %v836_v19 = vpop.permute.xlu0 %835 }
0x11b4   :  { %v838_v24 = vmul.f32 %v836_v19, %v833_v12  ;;  %v419_v27 = vpop.xlane.xlu2 %418 }
0x11b5   :  { %v424_v4 = vadd.f32 %v419_v27, %v2126_v61 }
0x11b6   :  { %v2145_v36 = vadd.f32 %v839_v20, %v838_v24 }
0x11b7   :  { %1688 = vtanh.f32 %v424_v4 }
0x11b8   :  { %v842_v21 = vmul.f32 %v2145_v36, %v2082_v18  ;;  %v1683_v18 = vpop.eup %1682 }
0x11b9   :  { %v1685_v33 = vpop.eup %1684  ;;  %v340_v15 = vmul.f32 1.442695, %v1683_v18 }
0x11ba   :  { %844 = vrot.lane.b32.xlu0 %v842_v21, %s1839_s12  ;;  %v1687_v5 = vpop.eup %1686  ;;  %v254_v39 = vmul.f32 1.442695, %v1685_v33 }
0x11bb   :  { %v512_v22 = vmul.f32 1.442695, %v1687_v5 }
0x11bd   :  { %v1689_v38 = vpop.eup %1688 }
0x11be   :  { %v426_v41 = vmul.f32 1.442695, %v1689_v38 }
0x11de   :  { %v2154_v29 = vpop.xlane.xlu0 %155 }
0x11df   :  { %v248_v30 = vadd.f32 %v247_v37, %v2154_v29  ;;  %v334_v31 = vadd.f32 %v333_v13, %v2154_v29  ;;  %v506_v32 = vadd.f32 %v505_v9, %v2154_v29  ;;  %v420_v34 = vadd.f32 %v419_v27, %v2154_v29 }
0x11e1   :  { %1690 = vtanh.f32 %v334_v31 }
0x11e2   :  { %1692 = vtanh.f32 %v506_v32 }
0x11e3   :  { %1694 = vtanh.f32 %v248_v30 }
0x11e4   :  { %676 = vadd.xlane.f32.xlu0 %v675_v40  ;;  %1696 = vtanh.f32 %v420_v34 }
0x11e5   :  { %1698 = vpow2.f32 %v340_v15 }
0x11e6   :  { %1700 = vpow2.f32 %v254_v39 }
0x11e7   :  { %v1691_v55 = vpop.eup %1690  ;;  %1702 = vpow2.f32 %v512_v22 }
0x11e8   :  { %v1693_v42 = vpop.eup %1692  ;;  %v336_v43 = vmul.f32 1.442695, %v1691_v55  ;;  %1704 = vpow2.f32 %v426_v41 }
0x11e9   :  { %v1695_v44 = vpop.eup %1694  ;;  %v508_v47 = vmul.f32 1.442695, %v1693_v42 }
0x11ea   :  { %v1697_v48 = vpop.eup %1696  ;;  %v250_v49 = vmul.f32 1.442695, %v1695_v44  ;;  %1706 = vpow2.f32 %v336_v43 }
0x11eb   :  { %v422_v50 = vmul.f32 1.442695, %v1697_v48  ;;  %1708 = vpow2.f32 %v508_v47  ;;  %v1699_v51 = vpop.eup %1698 }
0x11ec   :  { %1710 = vpow2.f32 %v250_v49  ;;  %v1701_v52 = vpop.eup %1700 }
0x11ed   :  { %1712 = vpow2.f32 %v422_v50  ;;  %v1703_v53 = vpop.eup %1702  ;;  %v879_v50 = vsel %vm870_vm6, %v2048_v56, %v2059_v35  ;;  %v1614_v56 = vld [vmem:[%s2603_s8 + $0x74] sm:$0xf0] }
0x11ee   :  { %v1705_v54 = vpop.eup %1704 }
0x11f0   :  { %v1707_v57 = vpop.eup %1706 }
0x11f1   :  { %v1709_v58 = vpop.eup %1708  ;;  %v342_v14 = vadd.f32 %v1707_v57, %v1699_v51 }
0x11f2   :  { %v1711_v59 = vpop.eup %1710  ;;  %v514_v60 = vadd.f32 %v1709_v58, %v1703_v53 }
0x11f3   :  { %v1713_v45 = vpop.eup %1712  ;;  %v256_v62 = vadd.f32 %v1711_v59, %v1701_v52  ;;  %v343_v1 = vadd.f32 1e-06, %v342_v14  ;;  %v1611_v14 = vld [vmem:[%s2603_s8 + $0x64] sm:$0xf] }
0x11f4   :  { %v428_v2 = vadd.f32 %v1713_v45, %v1705_v54  ;;  %v515_v3 = vadd.f32 1e-06, %v514_v60 }
0x11f5   :  { %v257_v7 = vadd.f32 1e-06, %v256_v62  ;;  %1714 = vrcp.f32 %v343_v1  ;;  %v876_v62 = vsel %vm870_vm6, %v2018_v46, %v2033_v25  ;;  %v591_v1 = vpop.xlane.xlu2 %590  ;;  %v1561_v25 = vld [vmem:[%s2603_s8 + $0x58] sm:$0xf0] }
0x11f6   :  { %v429_v11 = vadd.f32 1e-06, %v428_v2  ;;  %1716 = vrcp.f32 %v515_v3  ;;  %v1559_v2 = vld [vmem:[%s2603_s8 + $0x50] sm:$0xf]  ;;  %v1610_v3 = vld [vmem:[%s2603_s8 + $0x54] sm:$0xf0] }
0x11f7   :  { %1718 = vrcp.f32 %v257_v7  ;;  %v1609_v7 = vld [vmem:[%s2603_s8 + $0x54] sm:$0xf]  ;;  %v1560_v46 = vor.u32 %v1610_v3, %v1559_v2 }
0x11f8   :  { %1720 = vrcp.f32 %v429_v11  ;;  %v592_v11 = vadd.f32 %v591_v1, %v2154_v29 }
0x11fa   :  { %1722 = vtanh.f32 %v592_v11 }
0x11fb   :  { %v1715_v16 = vpop.eup %1714 }
0x11fc   :  { %v1717_v12 = vpop.eup %1716  ;;  %v345_v19 = vmul.f32 %v1715_v16, %v1707_v57  ;;  %v347_v20 = vmul.f32 %v1715_v16, %v1699_v51  ;;  %v1567_v57 = vld [vmem:[%s2603_s8 + $0x60] sm:$0xf]  ;;  %v1564_v16 = vor.u32 %v1609_v7, %v1561_v25 }
0x11fd   :  { %v1719_v24 = vpop.eup %1718  ;;  %v517_v21 = vmul.f32 %v1717_v12, %v1709_v58  ;;  %v519_v13 = vmul.f32 %v1717_v12, %v1703_v53  ;;  %v1575_v53 = vld [vmem:[%s2603_s8 + $0x70] sm:$0xf]  ;;  %v1612_v58 = vld [vmem:[%s2603_s8 + $0x64] sm:$0xf0] }
0x11fe   :  { %v1721_v37 = vpop.eup %1720  ;;  %v259_v9 = vmul.f32 %v1719_v24, %v1711_v59  ;;  %v261_v26 = vmul.f32 %v1719_v24, %v1701_v52  ;;  %v346_v27 = vmul.f32 %v345_v19, %v2133_v17  ;;  %v348_v8 = vmul.f32 %v347_v20, %v2097_v23  ;;  %v1551_v20 = vld [vmem:[%s2603_s8 + $0x40] sm:$0xf]  ;;  %v1608_v24 = vld [vmem:[%s2603_s8 + $0x44] sm:$0xf0] }
0x11ff   :  { %v431_v28 = vmul.f32 %v1721_v37, %v1713_v45  ;;  %v433_v4 = vmul.f32 %v1721_v37, %v1705_v54  ;;  %v518_v18 = vmul.f32 %v517_v21, %v2133_v17  ;;  %v520_v30 = vmul.f32 %v519_v13, %v2097_v23  ;;  %v1607_v21 = vld [vmem:[%s2603_s8 + $0x44] sm:$0xf]  ;;  %v1553_v37 = vld [vmem:[%s2603_s8 + $0x48] sm:$0xf0] }
0x1200   :  { %v260_v31 = vmul.f32 %v259_v9, %v2133_v17  ;;  %v262_v32 = vmul.f32 %v261_v26, %v2097_v23  ;;  %v349_v33 = vadd.f32 %v348_v8, %v346_v27  ;;  %v841_v54 = vpack.c.bf16 %v2145_v36, %v2145_v36  ;;  %v1569_v36 = vld [vmem:[%s2603_s8 + $0x68] sm:$0xf0]  ;;  %v1543_v27 = vld [vmem:[%s2603_s8 + $0x30] sm:$0xf]  ;;  %v1606_v8 = vld [vmem:[%s2603_s8 + $0x34] sm:$0xf0] }
0x1201   :  { %v432_v34 = vmul.f32 %v431_v28, %v2133_v17  ;;  %v434_v5 = vmul.f32 %v433_v4, %v2097_v23  ;;  %v521_v38 = vadd.f32 %v520_v30, %v518_v18  ;;  %v1568_v59 = vor.u32 %v1612_v58, %v1567_v57  ;;  %v1605_v28 = vld [vmem:[%s2603_s8 + $0x34] sm:$0xf]  ;;  %v1723_v30 = vpop.eup %1722 }
0x1202   :  { %v263_v15 = vadd.f32 %v262_v32, %v260_v31  ;;  %v350_v39 = vpack.c.bf16 %v349_v33, %v349_v33  ;;  %v1572_v60 = vor.u32 %v1611_v14, %v1569_v36  ;;  %v868_v45 = vunpack.c.l.b16 %v841_v54  ;;  %v1535_v31 = vld [vmem:[%s2603_s8 + $0x20] sm:$0xf]  ;;  %v1604_v32 = vld [vmem:[%s2603_s8 + $0x24] sm:$0xf0]  ;;  %v1603_v33 = vld [vmem:[%s2603_s8 + $0x24] sm:$0xf] }
0x1203   :  { %v435_v40 = vadd.f32 %v434_v5, %v432_v34  ;;  %v522_v22 = vpack.c.bf16 %v521_v38, %v521_v38  ;;  %v596_v19 = vadd.f32 %v591_v1, %v2126_v61  ;;  %v1552_v13 = vor.u32 %v1608_v24, %v1551_v20  ;;  %v1537_v5 = vld [vmem:[%s2603_s8 + $0x28] sm:$0xf0] }
0x1204   :  { %v884_v41 = vunpack.c.l.b16 %v350_v39  ;;  %v264_v42 = vpack.c.bf16 %v263_v15, %v263_v15  ;;  %v869_v12 = vpack.c.b16 %v868_v45, %v868_v45  ;;  %v1556_v9 = vor.u32 %v1607_v21, %v1553_v37  ;;  %v763_v45 = vpop.xlane.xlu2 %762 }
0x1205   :  { %v887_v55 = vunpack.c.l.b16 %v522_v22  ;;  %v436_v44 = vpack.c.bf16 %v435_v40, %v435_v40  ;;  %1724 = vtanh.f32 %v596_v19  ;;  %v1544_v4 = vor.u32 %v1606_v8, %v1543_v27  ;;  %v1527_v40 = vld [vmem:[%s2603_s8 + $0x10] sm:$0xf]  ;;  %v1602_v22 = vld [vmem:[%s2603_s8 + $0x14] sm:$0xf0] }
0x1206   :  { %v885_v43 = vpack.c.b16 %v884_v41, %v884_v41  ;;  %v882_v26 = vsel %vm870_vm6, %v2073_v6, %v869_v12  ;;  %v1545_v6 = vld [vmem:[%s2603_s8 + $0x38] sm:$0xf0]  ;;  %v1536_v34 = vor.u32 %v1604_v32, %v1535_v31  ;;  %v1540_v15 = vor.u32 %v1603_v33, %v1537_v5  ;;  %v1601_v41 = vld [vmem:[%s2603_s8 + $0x14] sm:$0xf] }
0x1207   :  { %v888_v47 = vpack.c.b16 %v887_v55, %v887_v55  ;;  %v1548_v18 = vor.u32 %v1605_v28, %v1545_v6  ;;  %v594_v39 = vmul.f32 1.442695, %v1723_v30  ;;  %v764_v30 = vadd.f32 %v763_v45, %v2154_v29 }
0x1208   :  { %v897_v48 = vsel %vm870_vm6, %v264_v42, %v885_v43  ;;  %v1528_v42 = vor.u32 %v1602_v22, %v1527_v40  ;;  %v1529_v43 = vld [vmem:[%s2603_s8 + $0x18] sm:$0xf0]  ;;  %v768_v31 = vadd.f32 %v763_v45, %v2126_v61 }
0x1209   :  { %923 = vrot.lane.b32.xlu0 %v897_v48, %s1840_s13  ;;  %v900_v49 = vsel %vm870_vm6, %v436_v44, %v888_v47  ;;  %v1519_v44 = vld [vmem:[%s2603_s8] sm:$0xf]  ;;  %v1600_v47 = vld [vmem:[%s2603_s8 + $0x4] sm:$0xf0]  ;;  %1726 = vpow2.f32 %v594_v39 }
0x120a   :  { %925 = vrot.lane.b32.xlu2 %v900_v49, %s1840_s13 }
0x120b   :  { %v1725_v38 = vpop.eup %1724 }
0x120c   :  { %v598_v48 = vmul.f32 1.442695, %v1725_v38  ;;  %v912_v3 = vpop.permute.xlu2 %911 }
0x1211   :  { %915 = vrot.lane.b32.xlu0 %v879_v50, %s1839_s12 }
0x1212   :  { %933 = vrot.lane.b32.xlu2 %v1972_v63, %s1838_s6  ;;  %v1613_v63 = vld [vmem:[%s2603_s8 + $0x74] sm:$0xf] }
0x1214   :  { %v932_v37 = vpop.permute.xlu2 %931 }
0x1219   :  { %935 = vrot.lane.b32.xlu0 %v1979_v0, %s1838_s6  ;;  %v1576_v0 = vor.u32 %v1614_v56, %v1575_v53  ;;  %v1521_v53 = vld [vmem:[%s2603_s8 + $0x8] sm:$0xf0]  ;;  %v1520_v56 = vor.u32 %v1600_v47, %v1519_v44 }
0x121b   :  { %1059 = vmatpush.bf16.msrb.mxu3 %v1576_v0  ;;  %v1727_v0 = vpop.eup %1726 }
0x121f   :  { %1060 = vmatpush.bf16.msrb.mxu3 %v1568_v59 }
0x1221   :  { %937 = vrot.lane.b32.xlu0 %v1993_v10, %s1838_s6  ;;  %v1577_v10 = vld [vmem:[%s2603_s8 + $0x78] sm:$0xf0] }
0x1222   :  { %v1580_v35 = vor.u32 %v1613_v63, %v1577_v10 }
0x1223   :  { %1061 = vmatpush.bf16.msrb.mxu3 %v1560_v46 }
0x1224   :  { %1088 = vmatpush.bf16.msrb.mxu1 %v1580_v35  ;;  %1615 = vmatpush.bf16.msrb.mxu2 %v1580_v35 }
0x1227   :  { %1062 = vmatpush.bf16.msrb.mxu3 %v1552_v13 }
0x1228   :  { %1089 = vmatpush.bf16.msrb.mxu1 %v1572_v60  ;;  %1616 = vmatpush.bf16.msrb.mxu2 %v1572_v60 }
0x122b   :  { %1063 = vmatpush.bf16.msrb.mxu3 %v1544_v4 }
0x122c   :  { %v845_v51 = vpop.permute.xlu0 %844  ;;  %1090 = vmatpush.bf16.msrb.mxu1 %v1564_v16  ;;  %1617 = vmatpush.bf16.msrb.mxu2 %v1564_v16 }
0x122d   :  { %v847_v52 = vsel %vm153_vm0, %v845_v51, 0.0  ;;  %v1532_v51 = vor.u32 %v1601_v41, %v1529_v43 }
0x122e   :  { %848 = vadd.xlane.f32.xlu1 %v847_v52  ;;  %v1599_v52 = vld [vmem:[%s2603_s8 + $0x4] sm:$0xf] }
0x122f   :  { %1064 = vmatpush.bf16.msrb.mxu3 %v1536_v34  ;;  %v1524_v63 = vor.u32 %v1599_v52, %v1521_v53 }
0x1230   :  { %1091 = vmatpush.bf16.msrb.mxu1 %v1556_v9  ;;  %1618 = vmatpush.bf16.msrb.mxu2 %v1556_v9 }
0x1233   :  { %1065 = vmatpush.bf16.msrb.mxu3 %v1528_v42 }
0x1234   :  { %1092 = vmatpush.bf16.msrb.mxu1 %v1548_v18  ;;  %1619 = vmatpush.bf16.msrb.mxu2 %v1548_v18 }
0x1237   :  { %1066 = vmatpush.bf16.msrb.mxu3 %v1520_v56 }
0x1238   :  { %1093 = vmatpush.bf16.msrb.mxu1 %v1540_v15  ;;  %1620 = vmatpush.bf16.msrb.mxu2 %v1540_v15 }
0x123c   :  { %1094 = vmatpush.bf16.msrb.mxu1 %v1532_v51  ;;  %1621 = vmatpush.bf16.msrb.mxu2 %v1532_v51 }
0x1240   :  { %1095 = vmatpush.bf16.msrb.mxu1 %v1524_v63  ;;  %1622 = vmatpush.bf16.msrb.mxu2 %v1524_v63 }
0x1247   :  { %913 = vrot.lane.b32.xlu1 %v876_v62, %s1839_s12 }
0x124f   :  { %917 = vrot.lane.b32.xlu1 %v882_v26, %s1839_s12 }
0x1257   :  { %v677_v55 = vpop.xlane.xlu0 %676 }
0x1258   :  { %v678_v49 = vadd.f32 %v677_v55, %v2154_v29  ;;  %v682_v50 = vadd.f32 %v677_v55, %v2126_v61 }
0x125a   :  { %1728 = vtanh.f32 %v678_v49 }
0x125b   :  { %1730 = vtanh.f32 %v682_v50 }
0x125c   :  { %1732 = vpow2.f32 %v598_v48 }
0x1260   :  { %v1729_v10 = vpop.eup %1728 }
0x1261   :  { %v1731_v35 = vpop.eup %1730  ;;  %v680_v54 = vmul.f32 1.442695, %v1729_v10 }
0x1262   :  { %v1733_v57 = vpop.eup %1732  ;;  %v684_v58 = vmul.f32 1.442695, %v1731_v35 }
0x1263   :  { %1734 = vpow2.f32 %v680_v54  ;;  %v600_v14 = vadd.f32 %v1733_v57, %v1727_v0 }
0x1264   :  { %1736 = vpow2.f32 %v684_v58  ;;  %v926_v47 = vpop.permute.xlu2 %925 }
0x1265   :  { %v601_v59 = vadd.f32 1e-06, %v600_v14 }
0x1267   :  { %1738 = vrcp.f32 %v601_v59 }
0x1269   :  { %v1735_v36 = vpop.eup %1734 }
0x126a   :  { %v1737_v60 = vpop.eup %1736 }
0x126b   :  { %v686_v62 = vadd.f32 %v1737_v60, %v1735_v36 }
0x126c   :  { %v934_v51 = vpop.permute.xlu2 %933 }
0x126d   :  { %v687_v1 = vadd.f32 1e-06, %v686_v62  ;;  %v1739_v2 = vpop.eup %1738 }
0x126e   :  { %v603_v7 = vmul.f32 %v1739_v2, %v1727_v0  ;;  %v605_v11 = vmul.f32 %v1739_v2, %v1733_v57 }
0x126f   :  { %1740 = vrcp.f32 %v687_v1 }
0x1270   :  { %v604_v12 = vmul.f32 %v603_v7, %v2133_v17  ;;  %v606_v19 = vmul.f32 %v605_v11, %v2097_v23  ;;  %1742 = vtanh.f32 %v764_v30 }
0x1271   :  { %1744 = vtanh.f32 %v768_v31 }
0x1272   :  { %v607_v26 = vadd.f32 %v606_v19, %v604_v12 }
0x1274   :  { %v608_v4 = vpack.c.bf16 %v607_v26, %v607_v26 }
0x1275   :  { %v1741_v46 = vpop.eup %1740 }
0x1276   :  { %v689_v25 = vmul.f32 %v1741_v46, %v1735_v36  ;;  %v691_v16 = vmul.f32 %v1741_v46, %v1737_v60  ;;  %v1743_v32 = vpop.eup %1742 }
0x1277   :  { %v1745_v33 = vpop.eup %1744  ;;  %v766_v34 = vmul.f32 1.442695, %v1743_v32 }
0x1278   :  { %v690_v20 = vmul.f32 %v689_v25, %v2133_v17  ;;  %v692_v24 = vmul.f32 %v691_v16, %v2097_v23  ;;  %v770_v38 = vmul.f32 1.442695, %v1745_v33 }
0x1279   :  { %1746 = vpow2.f32 %v766_v34 }
0x127a   :  { %v693_v21 = vadd.f32 %v692_v24, %v690_v20 }
0x127b   :  { %v924_v13 = vpop.permute.xlu0 %923 }
0x127c   :  { %v941_v9 = vsel %vm153_vm0, %v912_v3, %v924_v13  ;;  %v694_v27 = vpack.c.bf16 %v693_v21, %v693_v21 }
0x127d   :  { %v952_v8 = vsel %vm99_vm1, %v941_v9, %v932_v37 }
0x127e   :  { %1067 = vmatmul.bf16.vlgmr.msrb.gmra.mxu3 %v952_v8  ;;  %1096 = vmatmul.bf16.vlgmr.msrb.gmra.mxu1 %v952_v8  ;;  %v890_v28 = vunpack.c.l.b16 %v694_v27 }
0x127f   :  { %v1747_v40 = vpop.eup %1746 }
0x1280   :  { %v891_v6 = vpack.c.b16 %v890_v28, %v890_v28 }
0x1282   :  { %v903_v18 = vsel %vm870_vm6, %v608_v4, %v891_v6 }
0x1283   :  { %927 = vrot.lane.b32.xlu2 %v903_v18, %s1840_s13  ;;  %v916_v11 = vpop.permute.xlu0 %915 }
0x128b   :  { %v936_v46 = vpop.permute.xlu0 %935 }
0x1293   :  { %v938_v13 = vpop.permute.xlu0 %937 }
0x12a1   :  { %v849_v5 = vpop.xlane.xlu1 %848 }
0x12a2   :  { %v850_v15 = vadd.f32 %v849_v5, %v2154_v29  ;;  %v854_v39 = vadd.f32 %v849_v5, %v2126_v61 }
0x12a4   :  { %1748 = vtanh.f32 %v850_v15 }
0x12a5   :  { %1750 = vtanh.f32 %v854_v39 }
0x12a6   :  { %1752 = vpow2.f32 %v770_v38 }
0x12aa   :  { %v1749_v22 = vpop.eup %1748 }
0x12ab   :  { %v1751_v41 = vpop.eup %1750  ;;  %v852_v55 = vmul.f32 1.442695, %v1749_v22 }
0x12ac   :  { %v1753_v42 = vpop.eup %1752  ;;  %v856_v43 = vmul.f32 1.442695, %v1751_v41 }
0x12ad   :  { %1754 = vpow2.f32 %v852_v55  ;;  %v772_v44 = vadd.f32 %v1753_v42, %v1747_v40 }
0x12ae   :  { %1756 = vpow2.f32 %v856_v43 }
0x12af   :  { %v773_v48 = vadd.f32 1e-06, %v772_v44 }
0x12b1   :  { %1758 = vrcp.f32 %v773_v48 }
0x12b3   :  { %v1755_v49 = vpop.eup %1754 }
0x12b4   :  { %v1757_v50 = vpop.eup %1756 }
0x12b5   :  { %v858_v29 = vadd.f32 %v1757_v50, %v1755_v49 }
0x12b7   :  { %v859_v61 = vadd.f32 1e-06, %v858_v29  ;;  %v1759_v56 = vpop.eup %1758 }
0x12b8   :  { %v775_v0 = vmul.f32 %v1759_v56, %v1747_v40  ;;  %v777_v10 = vmul.f32 %v1759_v56, %v1753_v42 }
0x12b9   :  { %1760 = vrcp.f32 %v859_v61  ;;  %v914_v52 = vpop.permute.xlu1 %913 }
0x12ba   :  { %v944_v53 = vsel %vm153_vm0, %v914_v52, %v926_v47  ;;  %v776_v58 = vmul.f32 %v775_v0, %v2133_v17  ;;  %v778_v14 = vmul.f32 %v777_v10, %v2097_v23 }
0x12bb   :  { %v955_v63 = vsel %vm99_vm1, %v944_v53, %v934_v51 }
0x12bc   :  { %1072 = vmatmul.bf16.gmra.mxu3 %v955_v63  ;;  %1101 = vmatmul.bf16.gmra.mxu1 %v955_v63  ;;  %v779_v45 = vadd.f32 %v778_v14, %v776_v58  ;;  %v1841_v14 = vmov 0  }
0x12bd   :  { %1630 = vset.pattern.permute.xlu0 %v1841_v14  ;;  %1631 = vset.pattern.permute.xlu1 %v1841_v14 }
0x12be   :  { %v780_v2 = vpack.c.bf16 %v779_v45, %v779_v45  ;;  %1629 = vset.pattern.permute.xlu2 %v1841_v14 }
0x12bf   :  { %v1761_v35 = vpop.eup %1760 }
0x12c0   :  { %v861_v54 = vmul.f32 %v1761_v35, %v1755_v49  ;;  %v863_v57 = vmul.f32 %v1761_v35, %v1757_v50 }
0x12c1   :  { %v918_v37 = vpop.permute.xlu1 %917 }
0x12c2   :  { %v862_v59 = vmul.f32 %v861_v54, %v2133_v17  ;;  %v864_v36 = vmul.f32 %v863_v57, %v2097_v23 }
0x12c4   :  { %v865_v60 = vadd.f32 %v864_v36, %v862_v59 }
0x12c6   :  { %v866_v62 = vpack.c.bf16 %v865_v60, %v865_v60 }
0x12c8   :  { %v893_v1 = vunpack.c.l.b16 %v866_v62 }
0x12ca   :  { %v894_v3 = vpack.c.b16 %v893_v1, %v893_v1 }
0x12cc   :  { %v906_v7 = vsel %vm870_vm6, %v780_v2, %v894_v3 }
0x12cd   :  { %929 = vrot.lane.b32.xlu2 %v906_v7, %s1840_s13 }
0x12dd   :  { %v928_v25 = vpop.permute.xlu2 %927 }
0x12de   :  { %v947_v16 = vsel %vm153_vm0, %v916_v11, %v928_v25  ;;  %v2386_v25 = vld [vmem:[%s2604_s9 + $0x8] sm:$0xff] }
0x12df   :  { %v958_v12 = vsel %vm99_vm1, %v947_v16, %v936_v46  ;;  %vm1329_vm6 = vcmp.ne.s32.totalorder %v2386_v25, 0 }
0x12e0   :  { %1077 = vmatmul.bf16.gmra.mxu3 %v958_v12  ;;  %1106 = vmatmul.bf16.vlgmr.msrb.gmra.mxu2 %v958_v12 }
0x12fb   :  { %v2315_v23 = vpop.f32.mrf.mxu1 }
0x1301   :  { %v2317_v17 = vpop.f32.mrf.mxu3 }
0x1302   :  { %v1125_v19 = vmax.f32 %v2317_v17, %v2315_v23 }
0x1303   :  { %v2321_v20 = vpop.f32.mrf.mxu1 }
0x1304   :  { %1126 = vmax.xlane.f32.xlu1 %v1125_v19 }
0x1309   :  { %v2323_v24 = vpop.f32.mrf.mxu3 }
0x130a   :  { %v1128_v21 = vmax.f32 %v2323_v24, %v2321_v20 }
0x130c   :  { %1129 = vmax.xlane.f32.xlu2 %v1128_v21 }
0x1327   :  { %v930_v9 = vpop.permute.xlu2 %929 }
0x1328   :  { %v950_v26 = vsel %vm153_vm0, %v918_v37, %v930_v9 }
0x1329   :  { %v961_v27 = vsel %vm99_vm1, %v950_v26, %v938_v13 }
0x132a   :  { %1082 = vmatmul.bf16.gmra.mxu3 %v961_v27  ;;  %1111 = vmatmul.bf16.gmra.mxu2 %v961_v27 }
0x1339   :  { %v2329_v8 = vpop.f32.mrf.mxu1 }
0x133f   :  { %v2331_v28 = vpop.f32.mrf.mxu3 }
0x1340   :  { %v1131_v4 = vmax.f32 %v2331_v28, %v2329_v8 }
0x1341   :  { %v2335_v6 = vpop.f32.mrf.mxu1 }
0x1342   :  { %1132 = vmax.xlane.f32.xlu0 %v1131_v4 }
0x1347   :  { %v2337_v18 = vpop.f32.mrf.mxu3 }
0x1348   :  { %v1134_v30 = vmax.f32 %v2337_v18, %v2335_v6 }
0x134a   :  { %1135 = vmax.xlane.f32.xlu1 %v1134_v30 }
0x1363   :  { %v2341_v31 = vpop.f32.mrf.mxu3  ;;  %v2343_v32 = vpop.f32.mrf.mxu2 }
0x1364   :  { %v1137_v33 = vmax.f32 %v2341_v31, %v2343_v32 }
0x1366   :  { %1138 = vmax.xlane.f32.xlu2 %v1137_v33  ;;  %v2398_v33 = vld [vmem:[%s2604_s9 + $0x10] sm:$0xff] }
0x136b   :  { %v2347_v34 = vpop.f32.mrf.mxu3  ;;  %v2349_v5 = vpop.f32.mrf.mxu2 }
0x136c   :  { %v1140_v38 = vmax.f32 %v2347_v34, %v2349_v5 }
0x136e   :  { %1141 = vmax.xlane.f32.xlu0 %v1140_v38  ;;  %v2404_v38 = vld [vmem:[%s2604_s9] sm:$0xff] }
0x136f   :  { %vm1328_vm3 = vcmp.ne.s32.totalorder %v2404_v38, 0 }
0x1377   :  { %v2353_v15 = vpop.xlane.xlu1 %1126 }
0x1378   :  { %v1149_v39 = vsub.f32 %v2317_v17, %v2353_v15  ;;  %v1150_v40 = vsub.f32 %v2315_v23, %v2353_v15 }
0x137a   :  { %v1165_v22 = vmul.f32 1.442695, %v1149_v39  ;;  %v1167_v41 = vmul.f32 1.442695, %v1150_v40  ;;  %v2409_v39 = vld [vmem:[%s2604_s9 + $0x20] sm:$0xff]  ;;  %v2416_v40 = vld [vmem:[%s2604_s9 + $0x18] sm:$0xff] }
0x137c   :  { %1762 = vpow2.f32 %v1165_v22  ;;  %v2422_v22 = vld [vmem:[%s2604_s9 + $0x28] sm:$0xff] }
0x137d   :  { %1764 = vpow2.f32 %v1167_v41 }
0x137f   :  { %v2359_v55 = vpop.xlane.xlu2 %1129 }
0x1380   :  { %v1151_v42 = vsub.f32 %v2323_v24, %v2359_v55  ;;  %v1152_v43 = vsub.f32 %v2321_v20, %v2359_v55 }
0x1382   :  { %v1763_v44 = vpop.eup %1762  ;;  %v1169_v47 = vmul.f32 1.442695, %v1151_v42  ;;  %v1171_v48 = vmul.f32 1.442695, %v1152_v43 }
0x1383   :  { %v1765_v49 = vpop.eup %1764 }
0x1384   :  { %1766 = vpow2.f32 %v1169_v47  ;;  %v1197_v50 = vadd.f32 %v1765_v49, %v1763_v44  ;;  %v2440_v49 = vld [vmem:[%s2604_s9 + $0x30] sm:$0xff] }
0x1385   :  { %1768 = vpow2.f32 %v1171_v48 }
0x1386   :  { %1198 = vadd.xlane.f32.xlu0 %v1197_v50  ;;  %v2446_v50 = vld [vmem:[%s2604_s9 + $0x38] sm:$0xff] }
0x138a   :  { %v1767_v29 = vpop.eup %1766 }
0x138b   :  { %v1769_v61 = vpop.eup %1768 }
0x138c   :  { %v1200_v51 = vadd.f32 %v1769_v61, %v1767_v29 }
0x138e   :  { %1201 = vadd.xlane.f32.xlu1 %v1200_v51  ;;  %v1245_v51 = vlaneseq }
0x13ad   :  { %v2425_v41 = vpop.f32.mrf.mxu3  ;;  %v2427_v42 = vpop.f32.mrf.mxu2 }
0x13ae   :  { %v1143_v43 = vmax.f32 %v2425_v41, %v2427_v42 }
0x13b5   :  { %v2365_v52 = vpop.xlane.xlu0 %1132  ;;  %v2431_v44 = vpop.f32.mrf.mxu3 }
0x13b6   :  { %v1153_v53 = vsub.f32 %v2331_v28, %v2365_v52  ;;  %v1154_v56 = vsub.f32 %v2329_v8, %v2365_v52  ;;  %v2433_v47 = vpop.f32.mrf.mxu2 }
0x13b7   :  { %v1146_v48 = vmax.f32 %v2431_v44, %v2433_v47 }
0x13b8   :  { %v1173_v63 = vmul.f32 1.442695, %v1153_v53  ;;  %v1175_v0 = vmul.f32 1.442695, %v1154_v56 }
0x13ba   :  { %1770 = vpow2.f32 %v1173_v63  ;;  %v2457_v63 = vand.u32 127, %v1245_v51 }
0x13bb   :  { %1772 = vpow2.f32 %v1175_v0 }
0x13bd   :  { %v2371_v10 = vpop.xlane.xlu1 %1135 }
0x13be   :  { %v1155_v35 = vsub.f32 %v2337_v18, %v2371_v10  ;;  %v1156_v54 = vsub.f32 %v2335_v6, %v2371_v10 }
0x13c0   :  { %v1177_v57 = vmul.f32 1.442695, %v1155_v35  ;;  %v1179_v58 = vmul.f32 1.442695, %v1156_v54  ;;  %v1771_v59 = vpop.eup %1770  ;;  %v2462_v35 = vadd.s32 128, %v2457_v63 }
0x13c1   :  { %v1773_v36 = vpop.eup %1772 }
0x13c2   :  { %1774 = vpow2.f32 %v1177_v57  ;;  %v1203_v60 = vadd.f32 %v1773_v36, %v1771_v59 }
0x13c3   :  { %1776 = vpow2.f32 %v1179_v58 }
0x13c4   :  { %1204 = vadd.xlane.f32.xlu2 %v1203_v60 }
0x13c8   :  { %v1775_v45 = vpop.eup %1774 }
0x13c9   :  { %v1777_v62 = vpop.eup %1776 }
0x13ca   :  { %v1206_v1 = vadd.f32 %v1777_v62, %v1775_v45 }
0x13cc   :  { %1207 = vadd.xlane.f32.xlu0 %v1206_v1 }
0x13d9   :  { %v2377_v2 = vpop.xlane.xlu2 %1138 }
0x13da   :  { %v1157_v3 = vsub.f32 %v2341_v31, %v2377_v2  ;;  %v1158_v7 = vsub.f32 %v2343_v32, %v2377_v2 }
0x13dc   :  { %v1181_v11 = vmul.f32 1.442695, %v1157_v3  ;;  %v1183_v46 = vmul.f32 1.442695, %v1158_v7 }
0x13de   :  { %1778 = vpow2.f32 %v1181_v11 }
0x13df   :  { %1780 = vpow2.f32 %v1183_v46 }
0x13e0   :  { %1252 = vperm.xlu0 %1630, %v2386_v25  }
0x13e1   :  { %v2389_v16 = vpop.xlane.xlu0 %1141 }
0x13e2   :  { %v1159_v12 = vsub.f32 %v2347_v34, %v2389_v16  ;;  %v1160_v19 = vsub.f32 %v2349_v5, %v2389_v16 }
0x13e4   :  { %v1779_v21 = vpop.eup %1778  ;;  %v1185_v13 = vmul.f32 1.442695, %v1159_v12  ;;  %v1187_v37 = vmul.f32 1.442695, %v1160_v19 }
0x13e5   :  { %v1781_v9 = vpop.eup %1780 }
0x13e6   :  { %1782 = vpow2.f32 %v1185_v13  ;;  %v1209_v26 = vadd.f32 %v1781_v9, %v1779_v21 }
0x13e7   :  { %1784 = vpow2.f32 %v1187_v37 }
0x13e8   :  { %1210 = vadd.xlane.f32.xlu1 %v1209_v26 }
0x13ec   :  { %v1783_v27 = vpop.eup %1782 }
0x13ed   :  { %v1785_v4 = vpop.eup %1784 }
0x13ee   :  { %v1212_v30 = vadd.f32 %v1785_v4, %v1783_v27 }
0x13f0   :  { %1213 = vadd.xlane.f32.xlu2 %v1212_v30 }
0x13f9   :  { %v2449_v29 = vpop.xlane.xlu0 %1198 }
0x1401   :  { %1255 = vperm.xlu1 %1631, %v2398_v33   ;;  %v2459_v0 = vpop.xlane.xlu1 %1201 }
0x1408   :  { %1249 = vperm.xlu2 %1629, %v2404_v38  }
0x1409   :  { %1261 = vperm.xlu1 %1631, %v2409_v39  }
0x1410   :  { %1258 = vperm.xlu2 %1629, %v2416_v40  }
0x1418   :  { %1264 = vperm.xlu2 %1629, %v2422_v22  }
0x1433   :  { %1144 = vmax.xlane.f32.xlu1 %v1143_v43 }
0x1437   :  { %v2451_v61 = vpop.xlane.xlu2 %1204 }
0x143f   :  { %v2453_v53 = vpop.xlane.xlu0 %1207 }
0x1441   :  { %1147 = vmax.xlane.f32.xlu2 %v1146_v48 }
0x144c   :  { %1267 = vperm.xlu1 %1631, %v2440_v49  }
0x1452   :  { %v1253_v54 = vpop.permute.xlu0 %1252 }
0x1453   :  { %vm1274_vm7 = vcmp.eq.s32.totalorder %v2457_v63, %v1253_v54  ;;  %vm1275_vm8 = vcmp.eq.s32.totalorder %v2462_v35, %v1253_v54 }
0x1454   :  { %v1290_v60 = vsel %vm1274_vm7, %v2323_v24, 0.0  ;;  %v1291_v45 = vsel %vm1275_vm8, %v2321_v20, 0.0  ;;  %vm1330_vm8 = vcmp.ne.s32.totalorder %v2398_v33, 0 }
0x1455   :  { %v1307_v62 = vadd.f32 %v1291_v45, %v1290_v60 }
0x1459   :  { %1270 = vperm.xlu2 %1629, %v2446_v50  }
0x145b   :  { %v2470_v36 = vpop.xlane.xlu1 %1210 }
0x1463   :  { %v2455_v56 = vpop.xlane.xlu2 %1213 }
0x146b   :  { %v1250_v57 = vpop.permute.xlu2 %1249 }
0x146c   :  { %vm1272_vm0 = vcmp.eq.s32.totalorder %v2457_v63, %v1250_v57  ;;  %vm1273_vm1 = vcmp.eq.s32.totalorder %v2462_v35, %v1250_v57 }
0x146d   :  { %v1288_v58 = vsel %vm1272_vm0, %v2317_v17, 0.0  ;;  %v1289_v14 = vsel %vm1273_vm1, %v2315_v23, 0.0  ;;  %vm1368_vm0 = vcmask 7168  }
0x146e   :  { %v1304_v59 = vadd.f32 %v1289_v14, %v1288_v58 }
0x1470   :  { %1305 = vadd.xlane.f32.xlu0 %v1304_v59 }
0x1473   :  { %v1259_v1 = vpop.permute.xlu2 %1258  ;;  %v1256_v3 = vpop.permute.xlu1 %1255 }
0x1474   :  { %vm1276_vm9 = vcmp.eq.s32.totalorder %v2457_v63, %v1256_v3  ;;  %vm1277_vm10 = vcmp.eq.s32.totalorder %v2462_v35, %v1256_v3  ;;  %vm1278_vm13 = vcmp.eq.s32.totalorder %v2457_v63, %v1259_v1  ;;  %vm1279_vm14 = vcmp.eq.s32.totalorder %v2462_v35, %v1259_v1 }
0x1475   :  { %v1292_v23 = vsel %vm1276_vm9, %v2331_v28, 0.0  ;;  %v1293_v17 = vsel %vm1277_vm10, %v2329_v8, 0.0  ;;  %v1294_v43 = vsel %vm1278_vm13, %v2337_v18, 0.0  ;;  %v1295_v48 = vsel %vm1279_vm14, %v2335_v6, 0.0 }
0x1476   :  { %1308 = vadd.xlane.f32.xlu1 %v1307_v62  ;;  %v1310_v11 = vadd.f32 %v1293_v17, %v1292_v23  ;;  %v1313_v51 = vadd.f32 %v1295_v48, %v1294_v43  ;;  %v1842_v62 = vmov 0.0   ;;  %vm1333_vm9 = vcmp.ne.s32.totalorder %v2422_v22, 0 }
0x1477   :  { %v1582_v38 = vsel %vm1329_vm6, 1.0, %v1842_v62  ;;  %v1583_v25 = vsel %vm1330_vm8, 1.0, %v1842_v62  ;;  %v1586_v48 = vsel %vm1333_vm9, 1.0, %v1842_v62  ;;  %vm1331_vm10 = vcmp.ne.s32.totalorder %v2416_v40, 0 }
0x1478   :  { %v1399_v23 = vsel %vm1368_vm0, %v1582_v38, 0.0  ;;  %v1584_v22 = vsel %vm1331_vm10, 1.0, %v1842_v62  ;;  %vm1335_vm13 = vcmp.ne.s32.totalorder %v2446_v50, 0 }
0x147b   :  { %v1265_v7 = vpop.permute.xlu2 %1264  ;;  %v1262_v12 = vpop.permute.xlu1 %1261 }
0x147c   :  { %vm1282_vm11 = vcmp.eq.s32.totalorder %v2457_v63, %v1265_v7  ;;  %vm1283_vm12 = vcmp.eq.s32.totalorder %v2462_v35, %v1265_v7  ;;  %vm1280_vm4 = vcmp.eq.s32.totalorder %v2457_v63, %v1262_v12  ;;  %vm1281_vm5 = vcmp.eq.s32.totalorder %v2462_v35, %v1262_v12 }
0x147d   :  { %v1298_v20 = vsel %vm1282_vm11, %v2347_v34, 0.0  ;;  %v1299_v24 = vsel %vm1283_vm12, %v2349_v5, 0.0  ;;  %v1296_v6 = vsel %vm1280_vm4, %v2341_v31, 0.0  ;;  %v1297_v18 = vsel %vm1281_vm5, %v2343_v32, 0.0 }
0x147e   :  { %v1319_v46 = vadd.f32 %v1299_v24, %v1298_v20  ;;  %v1316_v3 = vadd.f32 %v1297_v18, %v1296_v6  ;;  %v1401_v7 = vsel %vm1368_vm0, %v1583_v25, 0.0  ;;  %vm1332_vm11 = vcmp.ne.s32.totalorder %v2409_v39, 0 }
0x147f   :  { %vm1334_vm12 = vcmp.ne.s32.totalorder %v2440_v49, 0  ;;  %v1588_v18 = vsel %vm1335_vm13, 1.0, %v1842_v62  ;;  %vm1435_vm4 = vcmask 0  }
0x1480   :  { %v1587_v40 = vsel %vm1334_vm12, 1.0, %v1842_v62 }
0x1481   :  { %v1409_v6 = vsel %vm1368_vm0, %v1587_v40, 0.0 }
0x1482   :  { %1311 = vadd.xlane.f32.xlu2 %v1310_v11 }
0x148a   :  { %1320 = vadd.xlane.f32.xlu2 %v1319_v46 }
0x14a6   :  { %v2482_v19 = vpop.xlane.xlu1 %1144 }
0x14a7   :  { %v1161_v28 = vsub.f32 %v2425_v41, %v2482_v19  ;;  %v1162_v8 = vsub.f32 %v2427_v42, %v2482_v19 }
0x14a9   :  { %v1189_v21 = vmul.f32 1.442695, %v1161_v28  ;;  %v1191_v13 = vmul.f32 1.442695, %v1162_v8 }
0x14ab   :  { %1786 = vpow2.f32 %v1189_v21 }
0x14ac   :  { %1788 = vpow2.f32 %v1191_v13 }
0x14b1   :  { %v1787_v37 = vpop.eup %1786 }
0x14b2   :  { %v1789_v9 = vpop.eup %1788 }
0x14b3   :  { %v1215_v34 = vadd.f32 %v1789_v9, %v1787_v37 }
0x14b4   :  { %v2488_v26 = vpop.xlane.xlu2 %1147 }
0x14b5   :  { %v1163_v5 = vsub.f32 %v2431_v44, %v2488_v26  ;;  %v1164_v27 = vsub.f32 %v2433_v47, %v2488_v26  ;;  %1216 = vadd.xlane.f32.xlu0 %v1215_v34 }
0x14b7   :  { %v1193_v4 = vmul.f32 1.442695, %v1163_v5  ;;  %v1195_v30 = vmul.f32 1.442695, %v1164_v27 }
0x14b9   :  { %1790 = vpow2.f32 %v1193_v4 }
0x14ba   :  { %1792 = vpow2.f32 %v1195_v30 }
0x14bb   :  { %1794 = vlog2.f32 %v2449_v29 }
0x14bc   :  { %v1271_v1 = vpop.permute.xlu2 %1270  ;;  %1796 = vlog2.f32 %v2459_v0 }
0x14bd   :  { %1314 = vadd.xlane.f32.xlu0 %v1313_v51  ;;  %vm1286_vm1 = vcmp.eq.s32.totalorder %v2457_v63, %v1271_v1  ;;  %vm1287_vm7 = vcmp.eq.s32.totalorder %v2462_v35, %v1271_v1  ;;  %1798 = vlog2.f32 %v2451_v61 }
0x14be   :  { %v1268_v54 = vpop.permute.xlu1 %1267  ;;  %v1302_v31 = vsel %vm1286_vm1, %v2431_v44, 0.0  ;;  %v1303_v32 = vsel %vm1287_vm7, %v2433_v47, 0.0  ;;  %1800 = vlog2.f32 %v2455_v56 }
0x14bf   :  { %v1791_v57 = vpop.eup %1790  ;;  %vm1284_vm15 = vcmp.eq.s32.totalorder %v2457_v63, %v1268_v54  ;;  %vm1285_vm2 = vcmp.eq.s32.totalorder %v2462_v35, %v1268_v54  ;;  %v1325_v11 = vadd.f32 %v1303_v32, %v1302_v31  ;;  %1802 = vlog2.f32 %v2453_v53 }
0x14c0   :  { %v1793_v58 = vpop.eup %1792  ;;  %v1300_v14 = vsel %vm1284_vm15, %v2425_v41, 0.0  ;;  %v1301_v59 = vsel %vm1285_vm2, %v2427_v42, 0.0  ;;  %v1581_v41 = vsel %vm1328_vm3, 1.0, %v1842_v62 }
0x14c1   :  { %v1218_v60 = vadd.f32 %v1793_v58, %v1791_v57  ;;  %v1322_v45 = vadd.f32 %v1301_v59, %v1300_v14  ;;  %v1398_v42 = vsel %vm1368_vm0, %v1581_v41, 0.0  ;;  %v1795_v24 = vpop.eup %1794  ;;  %v1403_v57 = vsel %vm1368_vm0, %v1584_v22, 0.0 }
0x14c2   :  { %v1400_v17 = vadd.f32 %v1399_v23, %v1398_v42  ;;  %v1222_v63 = vmul.f32 0.6931472, %v1795_v24  ;;  %v1797_v35 = vpop.eup %1796  ;;  %v1585_v58 = vsel %vm1332_vm11, 1.0, %v1842_v62  ;;  %v1407_v14 = vsel %vm1368_vm0, %v1586_v48, 0.0 }
0x14c3   :  { %1219 = vadd.xlane.f32.xlu1 %v1218_v60  ;;  %v1224_v44 = vmul.f32 0.6931472, %v1797_v35  ;;  %v1799_v21 = vpop.eup %1798  ;;  %v1405_v59 = vsel %vm1368_vm0, %v1585_v58, 0.0 }
0x14c4   :  { %v1402_v20 = vadd.f32 %v1401_v7, %v1400_v17  ;;  %v1237_v33 = vadd.f32 %v1222_v63, %v2353_v15  ;;  %v1226_v37 = vmul.f32 0.6931472, %v1799_v21 }
0x14c5   :  { %1323 = vadd.xlane.f32.xlu0 %v1322_v45  ;;  %v1238_v29 = vadd.f32 %v1224_v44, %v2359_v55  ;;  %v1801_v55 = vpop.eup %1800 }
0x14c6   :  { %v1239_v9 = vadd.f32 %v1226_v37, %v2365_v52  ;;  %v1232_v27 = vmul.f32 0.6931472, %v1801_v55 }
0x14c8   :  { %v1242_v56 = vadd.f32 %v1232_v27, %v2389_v16  ;;  %v1404_v16 = vadd.f32 %v1403_v57, %v1402_v20 }
0x14ca   :  { %v1406_v60 = vadd.f32 %v1405_v59, %v1404_v16 }
0x14cb   :  { %1317 = vadd.xlane.f32.xlu1 %v1316_v3  ;;  %v1803_v3 = vpop.eup %1802 }
0x14cc   :  { %v1408_v45 = vadd.f32 %v1407_v14, %v1406_v60  ;;  %v1228_v50 = vmul.f32 0.6931472, %v1803_v3 }
0x14ce   :  { %v1410_v39 = vadd.f32 %v1409_v6, %v1408_v45  ;;  %v1240_v31 = vadd.f32 %v1228_v50, %v2371_v10 }
0x14d3   :  { %1326 = vadd.xlane.f32.xlu1 %v1325_v11 }
0x14e3   :  { %v1306_v46 = vpop.xlane.xlu0 %1305 }
0x14e4   :  { %v1352_v12 = vsub.f32 %v1237_v33, %v1306_v46 }
0x14e6   :  { %v1360_v47 = vmul.f32 %v1581_v41, %v1352_v12  ;;  %v1411_v41 = vsel %vm1368_vm0, %v1588_v18, 0.0 }
0x14e7   :  { %v1412_v42 = vadd.f32 %v1411_v41, %v1410_v39 }
0x14e8   :  { %1369 = vst.msk [vmem:[%s2605_s10] sm:$0xff] %vm1368_vm0, %v1360_v47  ;;  %v1377_v13 = vsel %vm1368_vm0, %v1360_v47, 0.0 }
0x14e9   :  { %v1309_v28 = vpop.xlane.xlu1 %1308  ;;  %v1413_v1 = vrot.slane %v1412_v42, 4 }
0x14ea   :  { %v1353_v8 = vsub.f32 %v1238_v29, %v1309_v28 }
0x14eb   :  { %v1414_v49 = vadd.f32 %v1413_v1, %v1412_v42 }
0x14ec   :  { %v1361_v0 = vmul.f32 %v1582_v38, %v1353_v8 }
0x14ed   :  { %v1415_v38 = vrot.slane %v1414_v49, 2 }
0x14ee   :  { %1370 = vst.msk [vmem:[%s2605_s10 + $0x8] sm:$0xff] %vm1368_vm0, %v1361_v0  ;;  %v1378_v15 = vsel %vm1368_vm0, %v1361_v0, 0.0 }
0x14ef   :  { %v1379_v61 = vadd.f32 %v1378_v15, %v1377_v13  ;;  %v1416_v17 = vadd.f32 %v1415_v38, %v1414_v49 }
0x14f1   :  { %v1417_v32 = vrot.slane %v1416_v17, 1 }
0x14f3   :  { %v1418_v24 = vadd.f32 %v1417_v32, %v1416_v17 }
0x14f5   :  { %v1312_v34 = vpop.xlane.xlu2 %1311  ;;  %v1419_v46 = vmax.f32 %v1418_v24, 1.0 }
0x14f6   :  { %v1354_v5 = vsub.f32 %v1239_v9, %v1312_v34 }
0x14f7   :  { %vm1425_vm14 = vweird.f32 %v1419_v46  ;;  %v1429_v57 = vand.u32 2147483647, %v1419_v46 }
0x14f8   :  { %v1362_v4 = vmul.f32 %v1583_v25, %v1354_v5 }
0x14f9   :  { %vm1430_vm3 = vcmp.eq.f32.partialorder %v1429_v57, 8.507059e+37 }
0x14fa   :  { %1371 = vst.msk [vmem:[%s2605_s10 + $0x10] sm:$0xff] %vm1368_vm0, %v1362_v4  ;;  %v1380_v30 = vsel %vm1368_vm0, %v1362_v4, 0.0 }
0x14fb   :  { %v1381_v43 = vadd.f32 %v1380_v30, %v1379_v61 }
0x14fd   :  { %v1321_v52 = vpop.xlane.xlu2 %1320 }
0x14fe   :  { %v1357_v51 = vsub.f32 %v1242_v56, %v1321_v52 }
0x1500   :  { %v2544_v54 = vmul.f32 %v1586_v48, %v1357_v51 }
0x1502   :  { %1374 = vst.msk [vmem:[%s2605_s10 + $0x28] sm:$0xff] %vm1368_vm0, %v2544_v54  ;;  %v1386_v9 = vsel %vm1368_vm0, %v2544_v54, 0.0 }
0x1528   :  { %v1217_v23 = vpop.xlane.xlu0 %1216 }
0x1529   :  { %1804 = vlog2.f32 %v1217_v23 }
0x152a   :  { %1806 = vlog2.f32 %v2470_v36 }
0x152f   :  { %v1805_v25 = vpop.eup %1804 }
0x1530   :  { %v1315_v62 = vpop.xlane.xlu0 %1314  ;;  %v1234_v11 = vmul.f32 0.6931472, %v1805_v25  ;;  %v1807_v63 = vpop.eup %1806 }
0x1531   :  { %v1355_v7 = vsub.f32 %v1240_v31, %v1315_v62  ;;  %v1230_v44 = vmul.f32 0.6931472, %v1807_v63 }
0x1532   :  { %v1243_v10 = vadd.f32 %v1234_v11, %v2482_v19 }
0x1533   :  { %v1363_v20 = vmul.f32 %v1584_v22, %v1355_v7  ;;  %v1241_v29 = vadd.f32 %v1230_v44, %v2377_v2 }
0x1535   :  { %1372 = vst.msk [vmem:[%s2605_s10 + $0x18] sm:$0xff] %vm1368_vm0, %v1363_v20  ;;  %v1382_v53 = vsel %vm1368_vm0, %v1363_v20, 0.0 }
0x1536   :  { %v1383_v35 = vadd.f32 %v1382_v53, %v1381_v43  ;;  %v1220_v33 = vpop.xlane.xlu1 %1219 }
0x1537   :  { %1808 = vlog2.f32 %v1220_v33 }
0x1538   :  { %v1324_v36 = vpop.xlane.xlu0 %1323  ;;  %1810 = vrcp.f32 %v1419_v46 }
0x1539   :  { %v1358_v12 = vsub.f32 %v1243_v10, %v1324_v36 }
0x153b   :  { %v1366_v47 = vmul.f32 %v1587_v40, %v1358_v12 }
0x153d   :  { %1375 = vst.msk [vmem:[%s2605_s10 + $0x30] sm:$0xff] %vm1368_vm0, %v1366_v47  ;;  %v1809_v28 = vpop.eup %1808  ;;  %v1388_v5 = vsel %vm1368_vm0, %v1366_v47, 0.0 }
0x153e   :  { %v1318_v8 = vpop.xlane.xlu1 %1317  ;;  %v1811_v21 = vpop.eup %1810  ;;  %v1236_v13 = vmul.f32 0.6931472, %v1809_v28 }
0x153f   :  { %v1356_v0 = vsub.f32 %v1241_v29, %v1318_v8  ;;  %v1421_v37 = vmul.f32 %v1811_v21, %v1419_v46  ;;  %vm1426_vm15 = vweird.f32 %v1811_v21 }
0x1540   :  { %v1244_v2 = vadd.f32 %v1236_v13, %v2488_v26  ;;  %v1431_v26 = vand.u32 2147483648, %v1419_v46  ;;  %vm1427_vm2 = vmor %vm1425_vm14, %vm1426_vm15 }
0x1541   :  { %v1364_v19 = vmul.f32 %v1585_v58, %v1356_v0  ;;  %v1422_v30 = vsub.f32 1.0, %v1421_v37 }
0x1542   :  { %v1432_v58 = vor.u32 1.1754944e-38, %v1431_v26 }
0x1543   :  { %1373 = vst.msk [vmem:[%s2605_s10 + $0x20] sm:$0xff] %vm1368_vm0, %v1364_v19  ;;  %v1384_v15 = vsel %vm1368_vm0, %v1364_v19, 0.0  ;;  %v1423_v52 = vmul.f32 %v1811_v21, %v1422_v30 }
0x1544   :  { %v1385_v61 = vadd.f32 %v1384_v15, %v1383_v35 }
0x1545   :  { %v1424_v22 = vadd.f32 %v1811_v21, %v1423_v52 }
0x1546   :  { %v1387_v55 = vadd.f32 %v1386_v9, %v1385_v61  ;;  %v1327_v34 = vpop.xlane.xlu1 %1326 }
0x1547   :  { %v1359_v27 = vsub.f32 %v1244_v2, %v1327_v34  ;;  %v1428_v59 = vsel %vm1427_vm2, %v1811_v21, %v1424_v22 }
0x1548   :  { %v1389_v4 = vadd.f32 %v1388_v5, %v1387_v55  ;;  %v1433_v40 = vsel %vm1430_vm3, %v1432_v58, %v1428_v59 }
0x1549   :  { %v1367_v43 = vmul.f32 %v1588_v18, %v1359_v27 }
0x154b   :  { %1376 = vst.msk [vmem:[%s2605_s10 + $0x38] sm:$0xff] %vm1368_vm0, %v1367_v43  ;;  %v1390_v56 = vsel %vm1368_vm0, %v1367_v43, 0.0  ;;  %s1843_s10 = smov [#allocation2]  }
0x154c   :  { %v1391_v48 = vadd.f32 %v1390_v56, %v1389_v4  ;;  %s1444_s17 = sshll.u32 %s1843_s10, 4  ;;  %s1445_s17 = int_to_ptr.vmem [resolvable:$true] %s1444_s17 }
0x154e   :  { %v1392_v51 = vrot.slane %v1391_v48, 4 }
0x1550   :  { %v1393_v54 = vadd.f32 %v1392_v51, %v1391_v48 }
0x1552   :  { %v1394_v16 = vrot.slane %v1393_v54, 2 }
0x1554   :  { %v1395_v14 = vadd.f32 %v1394_v16, %v1393_v54 }
0x1556   :  { %v1396_v60 = vrot.slane %v1395_v14, 1 }
0x1558   :  { %v1397_v45 = vadd.f32 %v1396_v60, %v1395_v14 }
0x155a   :  { %v1434_v6 = vmul.f32 %v1433_v40, %v1397_v45 }
0x155c   :  { %1436 = vst.msk [vmem:[#allocation2] sm:$0x1] %vm1435_vm4, %v1434_v6 }
0x155d   :  { %1449 = dma.vmem_to_hbm [thread:$0]  %s1445_s17, 16, %s1447_s19, [#allocation3]  }
0x155e   :  { %1836 = dma.done.wait [#allocation3], 16  }
0x155f   :  { %1837 = vsyncadd [#allocation3], 4294967280 }
0x1560   :  { %1456 = vsyncpa [#allocation3], 1 }

</bundles_post_ra>
